<compile_context>
chip_gen: v7x
topology: tpu7x:2x2x1
jax: 0.10.0
libtpu: 0.0.40
codegen_flags: <defaults>
</compile_context>

<pallas_src>
import jax
import jax.numpy as jnp
from jax import lax
from jax.experimental import pallas as pl
from jax.experimental.pallas import tpu as pltpu


_VMEM_BUDGET = 32 * 1024 * 1024   # explicit budget, well under v7x's 64 MiB


# ------------------------------ tiling helpers ------------------------------ #

def _round_up(n, m):
    return ((n + m - 1) // m) * m


def _cdiv(a, b):
    return -(-a // b)


def _pick_lane_tile(p, cap=1024):
    """128-aligned lane tile TP and padded extent for a P-wide matmul output.

    Prefers >= 2 EQUAL tiles (balanced megacore / v7x 2-TC split) once there is
    enough work, caps the tile so double-buffered patch blocks stay small, and
    guarantees TP divides the padded extent so every store is unmasked.
    """
    if p <= 128:
        return 128, 128
    n = max(2, _cdiv(p, cap))
    tp = min(cap, _round_up(_cdiv(p, n), 128))
    n = _cdiv(p, tp)
    return tp, tp * n


def _pick_batch_tile(b, cap=256):
    """8-aligned (sublane) batch tile for the FC layer; >= 2 steps when big."""
    br = _round_up(b, 8)
    if br <= 8:
        return 8, 8
    n = max(2 if br >= 64 else 1, _cdiv(br, cap))
    tb = _round_up(_cdiv(br, n), 8)
    n = _cdiv(br, tb)
    return tb, tb * n


# ------------------------------ Pallas kernels ------------------------------ #

def _conv_pool_kernel(*refs):
    """refs = (patch_0, ..., patch_{n-1}, w_ref, b_ref, o_ref).

    patch_i: (K, TP) bf16  im2col patches for pool offset i (positions on lanes)
    w_ref  : (O, K)  bf16  conv weight, PyTorch (O, Cin, KH, KW) flattened
    b_ref  : (O, 1)  f32   bias (lane-broadcast)
    o_ref  : (O, TP) bf16  (pooled) conv output, positions on lanes

    Single MXU pass: (O, K) @ (K, n*TP) on the lane-concatenated patches, then
    the 2x2 max-pool is the elementwise max of the n TP-wide column groups
    (n == 1 is a plain conv).  f32 accumulation, bf16 lane-dense store.
    """
    *p_refs, w_ref, b_ref, o_ref = refs
    tp = o_ref.shape[1]
    if len(p_refs) == 1:
        acc = jnp.dot(w_ref[...], p_refs[0][...],
                      preferred_element_type=jnp.float32)
    else:
        cat = jnp.concatenate([p[...] for p in p_refs], axis=1)     # (K, n*TP)
        s = jnp.dot(w_ref[...], cat, preferred_element_type=jnp.float32)
        acc = s[:, 0:tp]
        for i in range(1, len(p_refs)):
            acc = jnp.maximum(acc, s[:, i * tp:(i + 1) * tp])
    o_ref[...] = (acc + b_ref[...]).astype(o_ref.dtype)


def conv_pool_matmul(patch_list, wmat, bias, *, lane_cap=1024):
    """max_i(wmat @ patch_list[i]) + bias, tiled along the P (lane) axis.

    patch_list: list of (K, P) bf16;  wmat: (O, K) bf16;  bias: (O, 1) f32
    returns (O, P) bf16.
    """
    K, P = patch_list[0].shape
    O = wmat.shape[0]
    tp, p_pad = _pick_lane_tile(P, lane_cap)
    if p_pad != P:                                   # well-defined zero padding
        patch_list = [jnp.pad(p, ((0, 0), (0, p_pad - P))) for p in patch_list]
    grid = (p_pad // tp,)                            # equal, 128-aligned tiles
    patch_spec = pl.BlockSpec((K, tp), lambda i: (0, i))
    out = pl.pallas_call(
        _conv_pool_kernel,
        out_shape=jax.ShapeDtypeStruct((O, p_pad), jnp.bfloat16),
        grid=grid,
        in_specs=[patch_spec] * len(patch_list) + [
            pl.BlockSpec((O, K), lambda i: (0, 0)),   # weight: resident, 1 DMA
            pl.BlockSpec((O, 1), lambda i: (0, 0)),   # bias:   resident
        ],
        out_specs=pl.BlockSpec((O, tp), lambda i: (0, i)),
        compiler_params=pltpu.CompilerParams(
            dimension_semantics=("parallel",),        # megacore / v7x 2-TC
            vmem_limit_bytes=_VMEM_BUDGET),
    )(*patch_list, wmat, bias)
    return out[:, :P]


def _fc_kernel(x_ref, w_ref, b_ref, o_ref):
    # x: (TB, K) bf16, w: (K, 128) bf16, b: (1, 128) f32, o: (TB, 128) f32
    o_ref[...] = (
        jnp.dot(x_ref[...], w_ref[...], preferred_element_type=jnp.float32)
        + b_ref[...])


def fc_layer(x, w_pad, bias_pad, *, batch_cap=256):
    """Batch-tiled Linear.  x: (B, 5120) bf16 -> (B, 128) f32 (cols >= 20 pad)."""
    B, K = x.shape
    O = w_pad.shape[1]                                # 128 (zero-padded from 20)
    tb, b_pad = _pick_batch_tile(B, batch_cap)
    if b_pad != B:
        x = jnp.pad(x, ((0, b_pad - B), (0, 0)))
    grid = (b_pad // tb,)
    out = pl.pallas_call(
        _fc_kernel,
        out_shape=jax.ShapeDtypeStruct((b_pad, O), jnp.float32),
        grid=grid,
        in_specs=[pl.BlockSpec((tb, K), lambda i: (i, 0)),
                  pl.BlockSpec((K, O), lambda i: (0, 0)),    # resident weight
                  pl.BlockSpec((1, O), lambda i: (0, 0))],   # resident bias
        out_specs=pl.BlockSpec((tb, O), lambda i: (i, 0)),
        compiler_params=pltpu.CompilerParams(
            dimension_semantics=("parallel",),
            vmem_limit_bytes=_VMEM_BUDGET),
    )(x, w_pad, bias_pad)
    return out[:B]


# ------------------------------- glue / model ------------------------------ #

def _im2col(act, kh, kw, hp, wp, dy, dx, stride):
    """Patches (Cin*kh*kw, B*hp*wp) from CNHW `act` at stride-`stride` output
    positions offset by (dy, dx).  Row index k = (c*kh + i)*kw + j matches the
    PyTorch Conv2d weight flatten; column index p = (b*hp + y)*wp + x."""
    taps = []
    for i in range(kh):
        for j in range(kw):
            y0, x0 = dy + i, dx + j
            taps.append(act[:, :,
                            y0: y0 + stride * (hp - 1) + 1: stride,
                            x0: x0 + stride * (wp - 1) + 1: stride])
    C, B = act.shape[0], act.shape[1]
    return jnp.stack(taps, axis=1).reshape(C * kh * kw, B * hp * wp)


def _conv_block(act, wmat, bias, kh, kw, *, pool):
    """VALID conv, stride 1, optional fused 2x2/2 max-pool.  act: (C,B,H,W) bf16."""
    C, B, H, W = act.shape
    O = wmat.shape[0]
    ho, wo = H - kh + 1, W - kw + 1
    if pool:
        hp, wp = ho // 2, wo // 2
        offsets, stride = ((0, 0), (0, 1), (1, 0), (1, 1)), 2
    else:
        hp, wp = ho, wo
        offsets, stride = ((0, 0),), 1
    patches = [_im2col(act, kh, kw, hp, wp, dy, dx, stride)
               for dy, dx in offsets]
    out = conv_pool_matmul(patches, wmat, bias)       # (O, B*hp*wp) bf16
    return out.reshape(O, B, hp, wp)


def prepare_params(params, compute_dtype=jnp.bfloat16):
    """One-time weight preprocessing (hoisted out of the forward pass)."""
    w1, b1, w2, b2, w3, b3, wo, bo = params

    def conv_w(w):                                    # (O,Cin,KH,KW) -> (O,K) bf16
        return w.reshape(w.shape[0], -1).astype(compute_dtype)

    def conv_b(b):                                    # (O,) -> (O, 1) f32
        return b.reshape(-1, 1).astype(jnp.float32)

    out_features, in_features = wo.shape              # (20, 5120)
    o_pad = _round_up(out_features, 128)              # 128 -> lane-dense FC store
    # CNHW activations flatten in PyTorch's CHW order, so the Linear weight
    # needs no permutation -- only a transpose + zero-pad to 128 output lanes.
    wo_pad = jnp.zeros((in_features, o_pad), compute_dtype)
    wo_pad = wo_pad.at[:, :out_features].set(wo.T.astype(compute_dtype))
    bo_pad = jnp.zeros((1, o_pad), jnp.float32)
    bo_pad = bo_pad.at[0, :out_features].set(bo.astype(jnp.float32))

    return dict(
        w1=conv_w(w1), b1=conv_b(b1),
        w2=conv_w(w2), b2=conv_b(b2),
        w3=conv_w(w3), b3=conv_b(b3),
        wo_t=wo_pad,                                  # (5120, 128) bf16
        bo=bo_pad,                                    # (1, 128)    f32
    )


@jax.jit
def cnn_forward(x_nchw, prep):
    """Pallas forward pass of CNN.  x_nchw: (B, 1, 42, 28) f32 -> two (B, 10)."""
    B = x_nchw.shape[0]
    act = jnp.transpose(x_nchw, (1, 0, 2, 3)).astype(jnp.bfloat16)    # CNHW
    act = _conv_block(act, prep["w1"], prep["b1"], 3, 3, pool=True)   # (32,B,20,13)
    act = _conv_block(act, prep["w2"], prep["b2"], 3, 2, pool=True)   # (64,B, 9, 6)
    act = _conv_block(act, prep["w3"], prep["b3"], 2, 2, pool=False)  # (128,B,8, 5)
    # Flatten(): CNHW -> (B, C*H*W), identical to PyTorch's NCHW flatten order.
    flat = jnp.transpose(act, (1, 0, 2, 3)).reshape(B, -1)            # (B, 5120)
    # Dropout(p=0.5): identity in eval mode.
    logits = fc_layer(flat, prep["wo_t"], prep["bo"])                 # (B, 128) f32
    return logits[:, 0:10], logits[:, 10:20]


# ----------------------------- pure-JAX references ------------------------- #

def ref_forward_f32(x, params):
    """Full-f32 reference with PyTorch semantics (NCHW)."""
    w1, b1, w2, b2, w3, b3, wo, bo = params

    def conv(x, w, b):
        y = lax.conv_general_dilated(
            x, w, window_strides=(1, 1), padding="VALID",
            dimension_numbers=("NCHW", "OIHW", "NCHW"),
            precision=lax.Precision.HIGHEST)
        return y + b[None, :, None, None]

    def pool(x):
        return lax.reduce_window(x, -jnp.inf, lax.max,
                                 (1, 1, 2, 2), (1, 1, 2, 2), "VALID")

    y = pool(conv(x, w1, b1))
    y = pool(conv(y, w2, b2))
    y = conv(y, w3, b3)
    y = y.reshape(y.shape[0], -1)
    y = jnp.dot(y, wo.T, precision=lax.Precision.HIGHEST) + bo
    return y[:, 0:10], y[:, 10:20]


def ref_forward_bf16(x, params):
    """Reference with the SAME bf16-input / f32-accumulate quantization points
    as the Pallas path -- enables a tight-tolerance layout/permutation check."""
    w1, b1, w2, b2, w3, b3, wo, bo = params
    bf = jnp.bfloat16

    def conv(x, w, b):
        y = lax.conv_general_dilated(
            x.astype(bf), w.astype(bf), window_strides=(1, 1), padding="VALID",
            dimension_numbers=("NCHW", "OIHW", "NCHW"),
            preferred_element_type=jnp.float32)
        return y + b[None, :, None, None].astype(jnp.float32)

    def pool(x):
        return lax.reduce_window(x, -jnp.inf, lax.max,
                                 (1, 1, 2, 2), (1, 1, 2, 2), "VALID")

    y = pool(conv(x, w1, b1)).astype(bf)
    y = pool(conv(y, w2, b2)).astype(bf)
    y = conv(y, w3, b3).astype(bf)
    y = y.reshape(y.shape[0], -1)
    y = jnp.dot(y, wo.T.astype(bf), preferred_element_type=jnp.float32) + bo
    return y[:, 0:10], y[:, 10:20]


# ---------------------------------- main ----------------------------------- #

if __name__ == "__main__":
    key = jax.random.PRNGKey(0)
    ks = jax.random.split(key, 9)

    # Deterministic synthetic parameters (shapes from CNN.__init__).
    w1 = 0.05 * jax.random.normal(ks[0], (32, 1, 3, 3), jnp.float32)
    b1 = 0.05 * jax.random.normal(ks[1], (32,), jnp.float32)
    w2 = 0.05 * jax.random.normal(ks[2], (64, 32, 3, 2), jnp.float32)
    b2 = 0.05 * jax.random.normal(ks[3], (64,), jnp.float32)
    w3 = 0.05 * jax.random.normal(ks[4], (128, 64, 2, 2), jnp.float32)
    b3 = 0.05 * jax.random.normal(ks[5], (128,), jnp.float32)
    wo = 0.05 * jax.random.normal(ks[6], (20, 5120), jnp.float32)
    bo = 0.05 * jax.random.normal(ks[7], (20,), jnp.float32)
    params = (w1, b1, w2, b2, w3, b3, wo, bo)

    # Input: (B, 1, 42, 28) NCHW -> the conv/pool stack flattens to 5120 feats.
    x = jax.random.normal(ks[8], (2, 1, 42, 28), jnp.float32)

    prep = prepare_params(params)               # one-time weight preprocessing
    out1, out2 = cnn_forward(x, prep)
    out1, out2 = jax.block_until_ready((out1, out2))
    assert out1.shape == (2, 10) and out2.shape == (2, 10)

    # Tight check vs. a reference with identical bf16 quantization points:
    # catches any layout / permutation / indexing / padding bug in the Pallas path.
    q1, q2 = ref_forward_bf16(x, params)
    assert jnp.allclose(out1, q1, atol=5e-3, rtol=5e-3), float(jnp.max(jnp.abs(out1 - q1)))
    assert jnp.allclose(out2, q2, atol=5e-3, rtol=5e-3), float(jnp.max(jnp.abs(out2 - q2)))

    # Looser end-to-end check vs. the full-f32 PyTorch-semantics reference:
    # bounds the bf16-input / f32-accumulate quantization error only.
    r1, r2 = ref_forward_f32(x, params)
    assert jnp.allclose(out1, r1, atol=4e-2, rtol=4e-2), float(jnp.max(jnp.abs(out1 - r1)))
    assert jnp.allclose(out2, r2, atol=4e-2, rtol=4e-2), float(jnp.max(jnp.abs(out2 - r2)))

    print("KERNEL_OK")
</pallas_src>

<mosaic_0001>
module attributes {stable_mosaic.version = 11 : i64} {
  func.func @_conv_pool_kernel(%arg0: i32, %arg1: memref<9x384xbf16, #tpu.memory_space<vmem>>, %arg2: memref<9x384xbf16, #tpu.memory_space<vmem>>, %arg3: memref<9x384xbf16, #tpu.memory_space<vmem>>, %arg4: memref<9x384xbf16, #tpu.memory_space<vmem>>, %arg5: memref<32x9xbf16, #tpu.memory_space<vmem>>, %arg6: memref<32x1xf32, #tpu.memory_space<vmem>>, %arg7: memref<32x384xbf16, #tpu.memory_space<vmem>>) attributes {dimension_semantics = [#tpu.dimension_semantics<parallel>], iteration_bounds = array<i64: 2>, scalar_prefetch = 0 : i64, scratch_operands = 0 : i64, tpu.core_type = #tpu.core_type<tc>, window_params = [{transform_indices = @transform_0, window_bounds = array<i64: 9, 384>}, {transform_indices = @transform_1, window_bounds = array<i64: 9, 384>}, {transform_indices = @transform_2, window_bounds = array<i64: 9, 384>}, {transform_indices = @transform_3, window_bounds = array<i64: 9, 384>}, {pipeline_mode = #tpu.pipeline_mode<synchronous>, transform_indices = @transform_4, window_bounds = array<i64: 32, 9>}, {pipeline_mode = #tpu.pipeline_mode<synchronous>, transform_indices = @transform_5, window_bounds = array<i64: 32, 1>}, {transform_indices = @transform_6, window_bounds = array<i64: 32, 384>}]} {
    %c0 = arith.constant 0 : index
    %c0_0 = arith.constant 0 : index
    %0 = vector.load %arg1[%c0, %c0_0] : memref<9x384xbf16, #tpu.memory_space<vmem>>, vector<9x384xbf16>
    %c0_1 = arith.constant 0 : index
    %c0_2 = arith.constant 0 : index
    %1 = vector.load %arg2[%c0_1, %c0_2] : memref<9x384xbf16, #tpu.memory_space<vmem>>, vector<9x384xbf16>
    %c0_3 = arith.constant 0 : index
    %c0_4 = arith.constant 0 : index
    %2 = vector.load %arg3[%c0_3, %c0_4] : memref<9x384xbf16, #tpu.memory_space<vmem>>, vector<9x384xbf16>
    %c0_5 = arith.constant 0 : index
    %c0_6 = arith.constant 0 : index
    %3 = vector.load %arg4[%c0_5, %c0_6] : memref<9x384xbf16, #tpu.memory_space<vmem>>, vector<9x384xbf16>
    %4 = tpu.concatenate %0, %1, %2, %3 in 1 : vector<9x384xbf16>, vector<9x384xbf16>, vector<9x384xbf16>, vector<9x384xbf16> -> vector<9x1536xbf16>
    %c0_7 = arith.constant 0 : index
    %c0_8 = arith.constant 0 : index
    %5 = vector.load %arg5[%c0_7, %c0_8] : memref<32x9xbf16, #tpu.memory_space<vmem>>, vector<32x9xbf16>
    %cst = arith.constant dense<0.000000e+00> : vector<32x1536xf32>
    %6 = tpu.matmul %5, %4, %cst {dimension_numbers = #tpu.dot_dimension_numbers<[1], [0], [0], [1], [0, 0, 1, 1], [], []>} : vector<32x9xbf16>, vector<9x1536xbf16>, vector<32x1536xf32> -> vector<32x1536xf32>
    %7 = vector.extract_strided_slice %6 {offsets = [0, 0], sizes = [32, 384], strides = [1, 1]} : vector<32x1536xf32> to vector<32x384xf32>
    %8 = vector.extract_strided_slice %6 {offsets = [0, 384], sizes = [32, 384], strides = [1, 1]} : vector<32x1536xf32> to vector<32x384xf32>
    %9 = arith.maximumf %7, %8 : vector<32x384xf32>
    %10 = vector.extract_strided_slice %6 {offsets = [0, 768], sizes = [32, 384], strides = [1, 1]} : vector<32x1536xf32> to vector<32x384xf32>
    %11 = arith.maximumf %9, %10 : vector<32x384xf32>
    %12 = vector.extract_strided_slice %6 {offsets = [0, 1152], sizes = [32, 384], strides = [1, 1]} : vector<32x1536xf32> to vector<32x384xf32>
    %13 = arith.maximumf %11, %12 : vector<32x384xf32>
    %c0_9 = arith.constant 0 : index
    %c0_10 = arith.constant 0 : index
    %14 = vector.load %arg6[%c0_9, %c0_10] : memref<32x1xf32, #tpu.memory_space<vmem>>, vector<32x1xf32>
    %15 = vector.broadcast %14 : vector<32x1xf32> to vector<32x384xf32>
    %16 = arith.addf %13, %15 : vector<32x384xf32>
    %17 = arith.truncf %16 : vector<32x384xf32> to vector<32x384xbf16>
    %c0_11 = arith.constant 0 : index
    %c0_12 = arith.constant 0 : index
    %18 = vector.load %arg7[%c0_11, %c0_12] : memref<32x384xbf16, #tpu.memory_space<vmem>>, vector<32x384xbf16>
    tpu.vector_store %arg7[%c0_11, %c0_12], %17 {strides = array<i32>} : memref<32x384xbf16, #tpu.memory_space<vmem>>, vector<32x384xbf16>,
    return
  }
  func.func @transform_0(%arg0: i32) -> (i32, i32) {
    %c0_i32 = arith.constant 0 : i32
    %c0_i32_0 = arith.constant 0 : i32
    return %c0_i32, %arg0 : i32, i32
  }
  func.func @transform_1(%arg0: i32) -> (i32, i32) {
    %c0_i32 = arith.constant 0 : i32
    %c0_i32_0 = arith.constant 0 : i32
    return %c0_i32, %arg0 : i32, i32
  }
  func.func @transform_2(%arg0: i32) -> (i32, i32) {
    %c0_i32 = arith.constant 0 : i32
    %c0_i32_0 = arith.constant 0 : i32
    return %c0_i32, %arg0 : i32, i32
  }
  func.func @transform_3(%arg0: i32) -> (i32, i32) {
    %c0_i32 = arith.constant 0 : i32
    %c0_i32_0 = arith.constant 0 : i32
    return %c0_i32, %arg0 : i32, i32
  }
  func.func @transform_4(%arg0: i32) -> (i32, i32) {
    %c0_i32 = arith.constant 0 : i32
    %c0_i32_0 = arith.constant 0 : i32
    %c0_i32_1 = arith.constant 0 : i32
    return %c0_i32, %c0_i32_0 : i32, i32
  }
  func.func @transform_5(%arg0: i32) -> (i32, i32) {
    %c0_i32 = arith.constant 0 : i32
    %c0_i32_0 = arith.constant 0 : i32
    %c0_i32_1 = arith.constant 0 : i32
    return %c0_i32, %c0_i32_0 : i32, i32
  }
  func.func @transform_6(%arg0: i32) -> (i32, i32) {
    %c0_i32 = arith.constant 0 : i32
    %c0_i32_0 = arith.constant 0 : i32
    return %c0_i32, %arg0 : i32, i32
  }
}

module attributes {stable_mosaic.version = 11 : i64} {
  func.func @_conv_pool_kernel(%arg0: i32, %arg1: memref<192x128xbf16, #tpu.memory_space<vmem>>, %arg2: memref<192x128xbf16, #tpu.memory_space<vmem>>, %arg3: memref<192x128xbf16, #tpu.memory_space<vmem>>, %arg4: memref<192x128xbf16, #tpu.memory_space<vmem>>, %arg5: memref<64x192xbf16, #tpu.memory_space<vmem>>, %arg6: memref<64x1xf32, #tpu.memory_space<vmem>>, %arg7: memref<64x128xbf16, #tpu.memory_space<vmem>>) attributes {dimension_semantics = [#tpu.dimension_semantics<parallel>], iteration_bounds = array<i64: 1>, scalar_prefetch = 0 : i64, scratch_operands = 0 : i64, tpu.core_type = #tpu.core_type<tc>, window_params = [{transform_indices = @transform_0, window_bounds = array<i64: 192, 128>}, {transform_indices = @transform_1, window_bounds = array<i64: 192, 128>}, {transform_indices = @transform_2, window_bounds = array<i64: 192, 128>}, {transform_indices = @transform_3, window_bounds = array<i64: 192, 128>}, {pipeline_mode = #tpu.pipeline_mode<synchronous>, transform_indices = @transform_4, window_bounds = array<i64: 64, 192>}, {pipeline_mode = #tpu.pipeline_mode<synchronous>, transform_indices = @transform_5, window_bounds = array<i64: 64, 1>}, {transform_indices = @transform_6, window_bounds = array<i64: 64, 128>}]} {
    %c0 = arith.constant 0 : index
    %c0_0 = arith.constant 0 : index
    %0 = vector.load %arg1[%c0, %c0_0] : memref<192x128xbf16, #tpu.memory_space<vmem>>, vector<192x128xbf16>
    %c0_1 = arith.constant 0 : index
    %c0_2 = arith.constant 0 : index
    %1 = vector.load %arg2[%c0_1, %c0_2] : memref<192x128xbf16, #tpu.memory_space<vmem>>, vector<192x128xbf16>
    %c0_3 = arith.constant 0 : index
    %c0_4 = arith.constant 0 : index
    %2 = vector.load %arg3[%c0_3, %c0_4] : memref<192x128xbf16, #tpu.memory_space<vmem>>, vector<192x128xbf16>
    %c0_5 = arith.constant 0 : index
    %c0_6 = arith.constant 0 : index
    %3 = vector.load %arg4[%c0_5, %c0_6] : memref<192x128xbf16, #tpu.memory_space<vmem>>, vector<192x128xbf16>
    %4 = tpu.concatenate %0, %1, %2, %3 in 1 : vector<192x128xbf16>, vector<192x128xbf16>, vector<192x128xbf16>, vector<192x128xbf16> -> vector<192x512xbf16>
    %c0_7 = arith.constant 0 : index
    %c0_8 = arith.constant 0 : index
    %5 = vector.load %arg5[%c0_7, %c0_8] : memref<64x192xbf16, #tpu.memory_space<vmem>>, vector<64x192xbf16>
    %cst = arith.constant dense<0.000000e+00> : vector<64x512xf32>
    %6 = tpu.matmul %5, %4, %cst {dimension_numbers = #tpu.dot_dimension_numbers<[1], [0], [0], [1], [0, 0, 1, 1], [], []>} : vector<64x192xbf16>, vector<192x512xbf16>, vector<64x512xf32> -> vector<64x512xf32>
    %7 = vector.extract_strided_slice %6 {offsets = [0, 0], sizes = [64, 128], strides = [1, 1]} : vector<64x512xf32> to vector<64x128xf32>
    %8 = vector.extract_strided_slice %6 {offsets = [0, 128], sizes = [64, 128], strides = [1, 1]} : vector<64x512xf32> to vector<64x128xf32>
    %9 = arith.maximumf %7, %8 : vector<64x128xf32>
    %10 = vector.extract_strided_slice %6 {offsets = [0, 256], sizes = [64, 128], strides = [1, 1]} : vector<64x512xf32> to vector<64x128xf32>
    %11 = arith.maximumf %9, %10 : vector<64x128xf32>
    %12 = vector.extract_strided_slice %6 {offsets = [0, 384], sizes = [64, 128], strides = [1, 1]} : vector<64x512xf32> to vector<64x128xf32>
    %13 = arith.maximumf %11, %12 : vector<64x128xf32>
    %c0_9 = arith.constant 0 : index
    %c0_10 = arith.constant 0 : index
    %14 = vector.load %arg6[%c0_9, %c0_10] : memref<64x1xf32, #tpu.memory_space<vmem>>, vector<64x1xf32>
    %15 = vector.broadcast %14 : vector<64x1xf32> to vector<64x128xf32>
    %16 = arith.addf %13, %15 : vector<64x128xf32>
    %17 = arith.truncf %16 : vector<64x128xf32> to vector<64x128xbf16>
    %c0_11 = arith.constant 0 : index
    %c0_12 = arith.constant 0 : index
    %18 = vector.load %arg7[%c0_11, %c0_12] : memref<64x128xbf16, #tpu.memory_space<vmem>>, vector<64x128xbf16>
    tpu.vector_store %arg7[%c0_11, %c0_12], %17 {strides = array<i32>} : memref<64x128xbf16, #tpu.memory_space<vmem>>, vector<64x128xbf16>,
    return
  }
  func.func @transform_0(%arg0: i32) -> (i32, i32) {
    %c0_i32 = arith.constant 0 : i32
    %c0_i32_0 = arith.constant 0 : i32
    return %c0_i32, %arg0 : i32, i32
  }
  func.func @transform_1(%arg0: i32) -> (i32, i32) {
    %c0_i32 = arith.constant 0 : i32
    %c0_i32_0 = arith.constant 0 : i32
    return %c0_i32, %arg0 : i32, i32
  }
  func.func @transform_2(%arg0: i32) -> (i32, i32) {
    %c0_i32 = arith.constant 0 : i32
    %c0_i32_0 = arith.constant 0 : i32
    return %c0_i32, %arg0 : i32, i32
  }
  func.func @transform_3(%arg0: i32) -> (i32, i32) {
    %c0_i32 = arith.constant 0 : i32
    %c0_i32_0 = arith.constant 0 : i32
    return %c0_i32, %arg0 : i32, i32
  }
  func.func @transform_4(%arg0: i32) -> (i32, i32) {
    %c0_i32 = arith.constant 0 : i32
    %c0_i32_0 = arith.constant 0 : i32
    %c0_i32_1 = arith.constant 0 : i32
    return %c0_i32, %c0_i32_0 : i32, i32
  }
  func.func @transform_5(%arg0: i32) -> (i32, i32) {
    %c0_i32 = arith.constant 0 : i32
    %c0_i32_0 = arith.constant 0 : i32
    %c0_i32_1 = arith.constant 0 : i32
    return %c0_i32, %c0_i32_0 : i32, i32
  }
  func.func @transform_6(%arg0: i32) -> (i32, i32) {
    %c0_i32 = arith.constant 0 : i32
    %c0_i32_0 = arith.constant 0 : i32
    return %c0_i32, %arg0 : i32, i32
  }
}

module attributes {stable_mosaic.version = 11 : i64} {
  func.func @_conv_pool_kernel(%arg0: i32, %arg1: memref<256x128xbf16, #tpu.memory_space<vmem>>, %arg2: memref<128x256xbf16, #tpu.memory_space<vmem>>, %arg3: memref<128x1xf32, #tpu.memory_space<vmem>>, %arg4: memref<128x128xbf16, #tpu.memory_space<vmem>>) attributes {dimension_semantics = [#tpu.dimension_semantics<parallel>], iteration_bounds = array<i64: 1>, scalar_prefetch = 0 : i64, scratch_operands = 0 : i64, tpu.core_type = #tpu.core_type<tc>, window_params = [{transform_indices = @transform_0, window_bounds = array<i64: 256, 128>}, {pipeline_mode = #tpu.pipeline_mode<synchronous>, transform_indices = @transform_1, window_bounds = array<i64: 128, 256>}, {pipeline_mode = #tpu.pipeline_mode<synchronous>, transform_indices = @transform_2, window_bounds = array<i64: 128, 1>}, {transform_indices = @transform_3, window_bounds = array<i64: 128, 128>}]} {
    %c0 = arith.constant 0 : index
    %c0_0 = arith.constant 0 : index
    %0 = vector.load %arg2[%c0, %c0_0] : memref<128x256xbf16, #tpu.memory_space<vmem>>, vector<128x256xbf16>
    %c0_1 = arith.constant 0 : index
    %c0_2 = arith.constant 0 : index
    %1 = vector.load %arg1[%c0_1, %c0_2] : memref<256x128xbf16, #tpu.memory_space<vmem>>, vector<256x128xbf16>
    %cst = arith.constant dense<0.000000e+00> : vector<128x128xf32>
    %2 = tpu.matmul %0, %1, %cst {dimension_numbers = #tpu.dot_dimension_numbers<[1], [0], [0], [1], [0, 0, 1, 1], [], []>} : vector<128x256xbf16>, vector<256x128xbf16>, vector<128x128xf32> -> vector<128x128xf32>
    %c0_3 = arith.constant 0 : index
    %c0_4 = arith.constant 0 : index
    %3 = vector.load %arg3[%c0_3, %c0_4] : memref<128x1xf32, #tpu.memory_space<vmem>>, vector<128x1xf32>
    %4 = vector.broadcast %3 : vector<128x1xf32> to vector<128x128xf32>
    %5 = arith.addf %2, %4 : vector<128x128xf32>
    %6 = arith.truncf %5 : vector<128x128xf32> to vector<128x128xbf16>
    %c0_5 = arith.constant 0 : index
    %c0_6 = arith.constant 0 : index
    %7 = vector.load %arg4[%c0_5, %c0_6] : memref<128x128xbf16, #tpu.memory_space<vmem>>, vector<128x128xbf16>
    tpu.vector_store %arg4[%c0_5, %c0_6], %6 {strides = array<i32>} : memref<128x128xbf16, #tpu.memory_space<vmem>>, vector<128x128xbf16>,
    return
  }
  func.func @transform_0(%arg0: i32) -> (i32, i32) {
    %c0_i32 = arith.constant 0 : i32
    %c0_i32_0 = arith.constant 0 : i32
    return %c0_i32, %arg0 : i32, i32
  }
  func.func @transform_1(%arg0: i32) -> (i32, i32) {
    %c0_i32 = arith.constant 0 : i32
    %c0_i32_0 = arith.constant 0 : i32
    %c0_i32_1 = arith.constant 0 : i32
    return %c0_i32, %c0_i32_0 : i32, i32
  }
  func.func @transform_2(%arg0: i32) -> (i32, i32) {
    %c0_i32 = arith.constant 0 : i32
    %c0_i32_0 = arith.constant 0 : i32
    %c0_i32_1 = arith.constant 0 : i32
    return %c0_i32, %c0_i32_0 : i32, i32
  }
  func.func @transform_3(%arg0: i32) -> (i32, i32) {
    %c0_i32 = arith.constant 0 : i32
    %c0_i32_0 = arith.constant 0 : i32
    return %c0_i32, %arg0 : i32, i32
  }
}

module attributes {stable_mosaic.version = 11 : i64} {
  func.func @_fc_kernel(%arg0: i32, %arg1: memref<8x5120xbf16, #tpu.memory_space<vmem>>, %arg2: memref<5120x128xbf16, #tpu.memory_space<vmem>>, %arg3: memref<1x128xf32, #tpu.memory_space<vmem>>, %arg4: memref<8x128xf32, #tpu.memory_space<vmem>>) attributes {dimension_semantics = [#tpu.dimension_semantics<parallel>], iteration_bounds = array<i64: 1>, scalar_prefetch = 0 : i64, scratch_operands = 0 : i64, tpu.core_type = #tpu.core_type<tc>, window_params = [{transform_indices = @transform_0, window_bounds = array<i64: 8, 5120>}, {pipeline_mode = #tpu.pipeline_mode<synchronous>, transform_indices = @transform_1, window_bounds = array<i64: 5120, 128>}, {pipeline_mode = #tpu.pipeline_mode<synchronous>, transform_indices = @transform_2, window_bounds = array<i64: 1, 128>}, {transform_indices = @transform_3, window_bounds = array<i64: 8, 128>}]} {
    %c0 = arith.constant 0 : index
    %c0_0 = arith.constant 0 : index
    %0 = vector.load %arg1[%c0, %c0_0] : memref<8x5120xbf16, #tpu.memory_space<vmem>>, vector<8x5120xbf16>
    %c0_1 = arith.constant 0 : index
    %c0_2 = arith.constant 0 : index
    %1 = vector.load %arg2[%c0_1, %c0_2] : memref<5120x128xbf16, #tpu.memory_space<vmem>>, vector<5120x128xbf16>
    %cst = arith.constant dense<0.000000e+00> : vector<8x128xf32>
    %2 = tpu.matmul %0, %1, %cst {dimension_numbers = #tpu.dot_dimension_numbers<[1], [0], [0], [1], [0, 0, 1, 1], [], []>} : vector<8x5120xbf16>, vector<5120x128xbf16>, vector<8x128xf32> -> vector<8x128xf32>
    %c0_3 = arith.constant 0 : index
    %c0_4 = arith.constant 0 : index
    %3 = vector.load %arg3[%c0_3, %c0_4] : memref<1x128xf32, #tpu.memory_space<vmem>>, vector<1x128xf32>
    %4 = vector.broadcast %3 : vector<1x128xf32> to vector<8x128xf32>
    %5 = arith.addf %2, %4 : vector<8x128xf32>
    %c0_5 = arith.constant 0 : index
    %c0_6 = arith.constant 0 : index
    %6 = vector.load %arg4[%c0_5, %c0_6] : memref<8x128xf32, #tpu.memory_space<vmem>>, vector<8x128xf32>
    tpu.vector_store %arg4[%c0_5, %c0_6], %5 {strides = array<i32>} : memref<8x128xf32, #tpu.memory_space<vmem>>, vector<8x128xf32>,
    return
  }
  func.func @transform_0(%arg0: i32) -> (i32, i32) {
    %c0_i32 = arith.constant 0 : i32
    %c0_i32_0 = arith.constant 0 : i32
    return %arg0, %c0_i32 : i32, i32
  }
  func.func @transform_1(%arg0: i32) -> (i32, i32) {
    %c0_i32 = arith.constant 0 : i32
    %c0_i32_0 = arith.constant 0 : i32
    %c0_i32_1 = arith.constant 0 : i32
    return %c0_i32, %c0_i32_0 : i32, i32
  }
  func.func @transform_2(%arg0: i32) -> (i32, i32) {
    %c0_i32 = arith.constant 0 : i32
    %c0_i32_0 = arith.constant 0 : i32
    %c0_i32_1 = arith.constant 0 : i32
    return %c0_i32, %c0_i32_0 : i32, i32
  }
  func.func @transform_3(%arg0: i32) -> (i32, i32) {
    %c0_i32 = arith.constant 0 : i32
    %c0_i32_0 = arith.constant 0 : i32
    return %arg0, %c0_i32 : i32, i32
  }
}

</mosaic_0001>

<bundles_post_ra>
// kernel: cnn_forward.4
= control target key start
LH: loop header
LB: loop body
LE: loop exit
PB: predicated region body
PF: predicated region fallthrough
CT: control target
= control target key end

     0   :  { %s1395_s21 = smov 0   ;;  %s1397_s22 = smov 0   ;;  %s1578_s0 = inlined_call_operand.vmem [shape: bf16[9,768], index: 0, kind: input, shape index: {}]   ;;  %s1579_s1 = inlined_call_operand.vmem [shape: bf16[9,768], index: 1, kind: input, shape index: {}]   ;;  %s1580_s2 = inlined_call_operand.vmem [shape: bf16[9,768], index: 2, kind: input, shape index: {}]   ;;  %s1581_s3 = inlined_call_operand.vmem [shape: bf16[9,768], index: 3, kind: input, shape index: {}]   ;;  %s1582_s4 = inlined_call_operand.vmem [shape: bf16[32,9], index: 4, kind: input, shape index: {}]   ;;  %s1583_s5 = inlined_call_operand.vmem [shape: f32[32,1], index: 5, kind: input, shape index: {}]   ;;  %s1584_s6 = inlined_call_operand.vmem [shape: bf16[32,768], index: 6, kind: output, shape index: {}]  }
   0x1   :  { %s1399_s23 = smov 0  }
   0x2 LB: > { %s1199_s24 = sadd.s32 4294967295, %s1356_s23   ;;  %s1412_s25 = sadd.s32 1, %s1356_s23   ;;  %s1356_s23 = sphi %s1399_s23, %s1589_s23   ;;  %s1352_s22 = sphi %s1397_s22, %s1588_s22   ;;  %s1348_s21 = sphi %s1395_s21, %s1587_s21  }
   0x3   : > { %s20_s26 = ssub.s32 %s1356_s23, %s1412_s25  ;;  %s23_s27 = sadd.s32 1, %s1352_s22 }
   0x4   : > { %p21_p0 = scmp.eq.s32.totalorder %s20_s26, 0  ;;  %p30_p1 = scmp.ne.s32.totalorder %s1352_s22, %s1348_s21 }
   0x5   : > { %p31_p2 = scmp.eq.s32.totalorder %s1356_s23, 0  ;;  %p180_p3 = scmp.eq.s32.totalorder %s1199_s24, 1 }
   0x6   : > { %s1423_s28 = scalar_select %p21_p0, %s1352_s22, %s23_s27  }
   0x7   : > { %p1425_p4 = por %p31_p2, %p30_p1  ;;  %p1429_p5 = por %p180_p3, %p30_p1 }
   0x8   : > { %p1202_p6 = scmp.ge.s32.totalorder %s1356_s23, 2 }
   0xa   : > { %208 = sbr.rel (%p1202_p6) target bundleno = 45 (0x2d), region = 24 }
  0x11   : > { %211 = sbr.rel (!%p1425_p4) target bundleno = 24 (0x18), region = 28  ;;  %s213_s7 = sand.u32 (%p1425_p4), 1, %s1352_s22  }
  0x12   : > { %s1269_s8 = smul.u32 (%p1425_p4), 12, %s1356_s23 }
  0x13   : > { %s1282_s9 = smul.u32 (%p1425_p4), 24, %s213_s7 }
  0x14   : > { %s218_s12 = scalar_lea.vmem (%p1425_p4), %s1578_s0, %s1269_s8 }
  0x15   : > { %v233_v0 = vld [vmem:[%s218_s12] sm:$0xff] (%p1425_p4)  ;;  %v235_v1 = vld [vmem:[%s218_s12 + $0x18] sm:$0xff] (%p1425_p4)  ;;  %v1204_v2 = vld [vmem:[%s218_s12 + $0x8] sm:$0xf] (%p1425_p4)  ;;  %s215_s13 = scalar_lea.vmem (%p1425_p4), [#allocation2], %s1282_s9 }
  0x16   : > { %234 = vst [vmem:[%s215_s13] sm:$0xff] (%p1425_p4), %v233_v0  ;;  %236 = vst [vmem:[%s215_s13 + $0xc] sm:$0xff] (%p1425_p4), %v235_v1  ;;  %v1206_v3 = vld [vmem:[%s218_s12 + $0x20] sm:$0xf] (%p1425_p4) }
  0x17   : > { %1205 = vst [vmem:[%s215_s13 + $0x8] sm:$0xf] (%p1425_p4), %v1204_v2  ;;  %1207 = vst [vmem:[%s215_s13 + $0x14] sm:$0xf] (%p1425_p4), %v1206_v3 }
  0x18 PF: > { %253 = sbr.rel (!%p1425_p4) target bundleno = 31 (0x1f), region = 54  ;;  %s255_s14 = sand.u32 (%p1425_p4), 1, %s1352_s22  }
  0x19   : > { %s1270_s15 = smul.u32 (%p1425_p4), 12, %s1356_s23 }
  0x1a   : > { %s1283_s16 = smul.u32 (%p1425_p4), 24, %s255_s14 }
  0x1b   : > { %s260_s19 = scalar_lea.vmem (%p1425_p4), %s1579_s1, %s1270_s15 }
  0x1c   : > { %v275_v4 = vld [vmem:[%s260_s19] sm:$0xff] (%p1425_p4)  ;;  %v277_v5 = vld [vmem:[%s260_s19 + $0x18] sm:$0xff] (%p1425_p4)  ;;  %v1209_v6 = vld [vmem:[%s260_s19 + $0x8] sm:$0xf] (%p1425_p4)  ;;  %s257_s20 = scalar_lea.vmem (%p1425_p4), [#allocation3], %s1283_s16 }
  0x1d   : > { %276 = vst [vmem:[%s257_s20] sm:$0xff] (%p1425_p4), %v275_v4  ;;  %278 = vst [vmem:[%s257_s20 + $0xc] sm:$0xff] (%p1425_p4), %v277_v5  ;;  %v1211_v7 = vld [vmem:[%s260_s19 + $0x20] sm:$0xf] (%p1425_p4) }
  0x1e   : > { %1210 = vst [vmem:[%s257_s20 + $0x8] sm:$0xf] (%p1425_p4), %v1209_v6  ;;  %1212 = vst [vmem:[%s257_s20 + $0x14] sm:$0xf] (%p1425_p4), %v1211_v7 }
  0x1f PF: > { %295 = sbr.rel (!%p1425_p4) target bundleno = 38 (0x26), region = 80  ;;  %s297_s26 = sand.u32 (%p1425_p4), 1, %s1352_s22  }
  0x20   : > { %s1271_s27 = smul.u32 (%p1425_p4), 12, %s1356_s23 }
  0x21   : > { %s1284_s7 = smul.u32 (%p1425_p4), 24, %s297_s26 }
  0x22   : > { %s302_s10 = scalar_lea.vmem (%p1425_p4), %s1580_s2, %s1271_s27 }
  0x23   : > { %v317_v8 = vld [vmem:[%s302_s10] sm:$0xff] (%p1425_p4)  ;;  %v319_v9 = vld [vmem:[%s302_s10 + $0x18] sm:$0xff] (%p1425_p4)  ;;  %v1214_v10 = vld [vmem:[%s302_s10 + $0x8] sm:$0xf] (%p1425_p4)  ;;  %s299_s11 = scalar_lea.vmem (%p1425_p4), [#allocation4], %s1284_s7 }
  0x24   : > { %318 = vst [vmem:[%s299_s11] sm:$0xff] (%p1425_p4), %v317_v8  ;;  %320 = vst [vmem:[%s299_s11 + $0xc] sm:$0xff] (%p1425_p4), %v319_v9  ;;  %v1216_v11 = vld [vmem:[%s302_s10 + $0x20] sm:$0xf] (%p1425_p4) }
  0x25   : > { %1215 = vst [vmem:[%s299_s11 + $0x8] sm:$0xf] (%p1425_p4), %v1214_v10  ;;  %1217 = vst [vmem:[%s299_s11 + $0x14] sm:$0xf] (%p1425_p4), %v1216_v11 }
  0x26 PF: > { %337 = sbr.rel (!%p1425_p4) target bundleno = 45 (0x2d), region = 106  ;;  %s339_s12 = sand.u32 (%p1425_p4), 1, %s1352_s22  }
  0x27   : > { %s1272_s13 = smul.u32 (%p1425_p4), 12, %s1356_s23 }
  0x28   : > { %s1285_s14 = smul.u32 (%p1425_p4), 24, %s339_s12 }
  0x29   : > { %s344_s17 = scalar_lea.vmem (%p1425_p4), %s1581_s3, %s1272_s13 }
  0x2a   : > { %v359_v12 = vld [vmem:[%s344_s17] sm:$0xff] (%p1425_p4)  ;;  %v361_v13 = vld [vmem:[%s344_s17 + $0x18] sm:$0xff] (%p1425_p4)  ;;  %v1219_v14 = vld [vmem:[%s344_s17 + $0x8] sm:$0xf] (%p1425_p4)  ;;  %s341_s18 = scalar_lea.vmem (%p1425_p4), [#allocation5], %s1285_s14 }
  0x2b   : > { %360 = vst [vmem:[%s341_s18] sm:$0xff] (%p1425_p4), %v359_v12  ;;  %362 = vst [vmem:[%s341_s18 + $0xc] sm:$0xff] (%p1425_p4), %v361_v13  ;;  %v1221_v15 = vld [vmem:[%s344_s17 + $0x20] sm:$0xf] (%p1425_p4) }
  0x2c   : > { %1220 = vst [vmem:[%s341_s18 + $0x8] sm:$0xf] (%p1425_p4), %v1219_v14  ;;  %1222 = vst [vmem:[%s341_s18 + $0x14] sm:$0xf] (%p1425_p4), %v1221_v15 }
  0x2d PF: > { %p1223_p7 = scmp.ge.s32.totalorder %s1356_s23, 1  ;;  %p378_p8 = scmp.lt.s32.totalorder %s1356_s23, 3 }
  0x2f   : > { %p379_p9 = pnand %p1223_p7, %p378_p8 }
  0x30   : > { %s385_s29 = sand.u32 (!%p379_p9), 1, %s1348_s21   ;;  %vm541_vm0 = vcmask (!%p379_p9), 1043456   ;;  %vm542_vm1 = vcmask (!%p379_p9), 1044480   ;;  %v1358_v16 = vmov (!%p379_p9), 65535   ;;  %v1359_v18 = vmov (!%p379_p9), 0   ;;  %v935_v20 = vld [vmem:[%s1583_s5] sm:$0xff] (!%p379_p9) }
  0x31   : > { %382 = sbr.rel (%p379_p9) target bundleno = 332 (0x14c), region = 132  ;;  %v543_v17 = vsel (!%p379_p9), %vm541_vm0, 4294967295, %v1358_v16  ;;  %613 = vmatprep.mubr.bf16.mxu0 (!%p379_p9), %v1359_v18  ;;  %666 = vmatprep.mubr.bf16.mxu1 (!%p379_p9), %v1359_v18  ;;  %v936_v21 = vld [vmem:[%s1583_s5 + $0x8] sm:$0xff] (!%p379_p9)  ;;  %vm534_vm2 = vcmask (!%p379_p9), 72704   ;;  %v1323_v29 = vld [vmem:[%s1582_s4] sm:$0xff] (!%p379_p9)   ;;  %v937_v36 = vld [vmem:[%s1583_s5 + $0x10] sm:$0xff] (!%p379_p9) }
  0x32   : > { %s1286_s19 = smul.u32 (!%p379_p9), 24, %s385_s29  ;;  %v1469_v19 = vsel (!%p379_p9), %vm542_vm1, %v543_v17, 0  ;;  %1314 = vset.pattern.permute.xlu0 (!%p379_p9), %v1359_v18  ;;  %1315 = vset.pattern.permute.xlu1 (!%p379_p9), %v1359_v18  ;;  %v938_v43 = vld [vmem:[%s1583_s5 + $0x18] sm:$0xff] (!%p379_p9)  ;;  %v1328_v45 = vld [vmem:[%s1582_s4 + $0x8] sm:$0xff] (!%p379_p9)  }
  0x33   : > { %941 = vperm.xlu0 (!%p379_p9), %1314, %v935_v20   ;;  %951 = vperm.xlu1 (!%p379_p9), %1315, %v937_v36   ;;  %s1287_s20 = smul.u32 (!%p379_p9), 48, %s385_s29 }
  0x34   : > { %s387_s8 = scalar_lea.vmem (!%p379_p9), [#allocation2], %s1286_s19  ;;  %s394_s9 = scalar_lea.vmem (!%p379_p9), [#allocation3], %s1286_s19 }
  0x35   : > { %v1316_v22 = vld [vmem:[%s387_s8 + $0x4] ss:$12 sps:$4 sm:$0x1f] (!%p379_p9)   ;;  %s1479_s10 = scalar_lea.vmem (!%p379_p9), [#allocation4], %s1286_s19  ;;  %s1486_s13 = scalar_lea.vmem (!%p379_p9), [#allocation5], %s1286_s19 }
  0x36   : > { %v1318_v23 = vld [vmem:[%s394_s9] ss:$12 sps:$4 sm:$0x1f] (!%p379_p9)   ;;  %v1320_v24 = vld [vmem:[%s394_s9 + $0x4] ss:$12 sps:$4 sm:$0x1f] (!%p379_p9)   ;;  %v549_v25 = vand.u32 (!%p379_p9), %v1316_v22, %v1469_v19 }
  0x37   : > { %v1321_v26 = vld [vmem:[%s387_s8] ss:$12 sps:$4 sm:$0x1f] (!%p379_p9)   ;;  %v555_v27 = vand.u32 (!%p379_p9), %v1318_v23, %v1469_v19  ;;  %v1322_v28 = vld [vmem:[%s387_s8 + $0x8] ss:$12 sps:$4 sm:$0x1f] (!%p379_p9)   ;;  %946 = vperm.xlu0 (!%p379_p9), %1314, %v936_v21   ;;  %v558_v34 = vand.u32 (!%p379_p9), %v1320_v24, %v1469_v19  ;;  %956 = vperm.xlu1 (!%p379_p9), %1315, %v938_v43  }
  0x38   : > { %581 = vmatprep.subr.bf16.mxu0 %v549_v25  ;;  %v546_v30 = vand.u32 %v1321_v26, %v1469_v19  ;;  %v552_v31 = vand.u32 %v1322_v28, %v1469_v19  ;;  %v1324_v32 = vld [vmem:[%s394_s9 + $0x8] ss:$12 sps:$4 sm:$0x1f]   ;;  %v1325_v33 = vld [vmem:[%s1479_s10] ss:$12 sps:$4 sm:$0x1f]  }
  0x39   : > { %634 = vmatprep.subr.bf16.mxu1 %v555_v27  ;;  %v1327_v35 = vld [vmem:[%s1479_s10 + $0x4] ss:$12 sps:$4 sm:$0x1f]   ;;  %v561_v37 = vand.u32 %v1324_v32, %v1469_v19  ;;  %v564_v40 = vand.u32 %v1325_v33, %v1469_v19  ;;  %v1332_v46 = vld [vmem:[%s1479_s10 + $0x8] ss:$12 sps:$4 sm:$0x1f]  }
  0x3a   : > { %582 = vmatpush1.bf16.msra.mxu0 %v546_v30  ;;  %635 = vmatpush1.bf16.msra.mxu1 %v552_v31  ;;  %v1329_v38 = vld [vmem:[%s1486_s13] ss:$12 sps:$4 sm:$0x1f]   ;;  %v567_v39 = vand.u32 %v1327_v35, %v1469_v19  ;;  %v1333_v42 = vld [vmem:[%s1486_s13 + $0x8] ss:$12 sps:$4 sm:$0x1f]   ;;  %v570_v48 = vand.u32 %v1332_v46, %v1469_v19 }
  0x3b   : > { %687 = vmatprep.subr.bf16.mxu0 %v561_v37  ;;  %v573_v41 = vand.u32 %v1329_v38, %v1469_v19  ;;  %v579_v44 = vand.u32 %v1333_v42, %v1469_v19  ;;  %v1331_v47 = vld [vmem:[%s1486_s13 + $0x4] ss:$12 sps:$4 sm:$0x1f]   ;;  %s1543_s21 = scalar_lea.vmem [#allocation6], %s1287_s20  ;;  %s1281_s29 = smul.u32 (%p1429_p5), 12, %s1199_s24 }
  0x3c   : > { %740 = vmatprep.subr.bf16.mxu1 %v567_v39  ;;  %v576_v49 = vand.u32 %v1331_v47, %v1469_v19 }
  0x3d   : > { %1238 = vmatmul.mubr.msk.bf16.vlgmr.msra.gmra.mrb[0].mxu0 %vm534_vm2, %v1323_v29  ;;  %1240 = vmatmul.mubr.msk.bf16.vlgmr.msra.gmra.mrb[0].mxu1 %vm534_vm2, %v1323_v29  ;;  %s1028_s27 = scalar_lea.vmem (%p1429_p5), %s1584_s6, %s1281_s29 }
  0x3e   : > { %688 = vmatpush1.bf16.msra.mxu0 %v558_v34  ;;  %623 = vmatprep.mubr.bf16.mxu0 %v1359_v18 }
  0x3f   : > { %741 = vmatpush1.bf16.msra.mxu1 %v564_v40  ;;  %676 = vmatprep.mubr.bf16.mxu1 %v1359_v18 }
  0x40   : > { %793 = vmatprep.subr.bf16.mxu0 %v573_v41  ;;  %846 = vmatprep.subr.bf16.mxu1 %v579_v44 }
  0x45   : > { %1239 = vmatmul.mubr.msk.bf16.gmra.mrb[4].mxu0 %vm534_vm2, %v1328_v45  ;;  %1241 = vmatmul.mubr.msk.bf16.gmra.mrb[4].mxu1 %vm534_vm2, %v1328_v45 }
  0x46   : > { %719 = vmatprep.mubr.bf16.mxu0 %v1359_v18  ;;  %772 = vmatprep.mubr.bf16.mxu1 %v1359_v18 }
  0x4d   : > { %1242 = vmatmul.mubr.msk.bf16.vlgmr.msra.gmra.mrb[8].mxu0 %vm534_vm2, %v1323_v29  ;;  %1244 = vmatmul.mubr.msk.bf16.vlgmr.msra.gmra.mrb[8].mxu1 %vm534_vm2, %v1323_v29 }
  0x4e   : > { %794 = vmatpush1.bf16.msra.mxu0 %v570_v48  ;;  %847 = vmatpush1.bf16.msra.mxu1 %v576_v49 }
  0x4f   : > { %729 = vmatprep.mubr.bf16.mxu0 %v1359_v18  ;;  %782 = vmatprep.mubr.bf16.mxu1 %v1359_v18 }
  0x55   : > { %1243 = vmatmul.mubr.msk.bf16.gmra.mrb[12].mxu0 %vm534_vm2, %v1328_v45  ;;  %1245 = vmatmul.mubr.msk.bf16.gmra.mrb[12].mxu1 %vm534_vm2, %v1328_v45 }
  0x56   : > { %825 = vmatprep.mubr.bf16.mxu0 %v1359_v18  ;;  %878 = vmatprep.mubr.bf16.mxu1 %v1359_v18 }
  0x5d   : > { %1246 = vmatmul.mubr.msk.bf16.vlgmr.msra.gmra.mrb[16].mxu0 %vm534_vm2, %v1323_v29  ;;  %1248 = vmatmul.mubr.msk.bf16.vlgmr.msra.gmra.mrb[16].mxu1 %vm534_vm2, %v1323_v29 }
  0x5e   : > { %835 = vmatprep.mubr.bf16.mxu0 %v1359_v18  ;;  %888 = vmatprep.mubr.bf16.mxu1 %v1359_v18 }
  0x65   : > { %1247 = vmatmul.mubr.msk.bf16.gmra.mrb[20].mxu0 %vm534_vm2, %v1328_v45  ;;  %1249 = vmatmul.mubr.msk.bf16.gmra.mrb[20].mxu1 %vm534_vm2, %v1328_v45 }
  0xb2   : > { %v942_v23 = vpop.permute.xlu0 %941 }
  0xb6   : > { %v947_v40 = vpop.permute.xlu0 %946 }
 0x110   : > { %v615_v50 = vpop.f32.mrb[0].mxu0  ;;  %v668_v51 = vpop.f32.mrb[0].mxu1 }
 0x111   : > { %v617_v52 = vpop.f32.mrb[1].mxu0  ;;  %v670_v53 = vpop.f32.mrb[1].mxu1 }
 0x112   : > { %v619_v54 = vpop.f32.mrb[2].mxu0  ;;  %v899_v55 = vmax.f32 %v615_v50, %v670_v53  ;;  %v672_v56 = vpop.f32.mrb[2].mxu1 }
 0x113   : > { %v621_v57 = vpop.f32.mrb[3].mxu0  ;;  %v674_v58 = vpop.f32.mrb[3].mxu1 }
 0x114   : > { %v902_v59 = vmax.f32 %v619_v54, %v674_v58 }
 0x118   : > { %v625_v60 = vpop.f32.mrb[4].mxu0  ;;  %v1535_v61 = vpop.f32.mrb[4].mxu1 }
 0x119   : > { %v627_v62 = vpop.f32.mrb[5].mxu0  ;;  %v680_v63 = vpop.f32.mrb[5].mxu1 }
 0x11a   : > { %v629_v0 = vpop.f32.mrb[6].mxu0  ;;  %v905_v1 = vmax.f32 %v625_v60, %v680_v63  ;;  %v1537_v2 = vpop.f32.mrb[6].mxu1 }
 0x11b   : > { %v631_v3 = vpop.f32.mrb[7].mxu0  ;;  %v684_v4 = vpop.f32.mrb[7].mxu1 }
 0x11c   : > { %v908_v5 = vmax.f32 %v629_v0, %v684_v4  ;;  %v952_v0 = vpop.permute.xlu1 %951 }
 0x120   : > { %v721_v6 = vpop.f32.mrb[8].mxu0  ;;  %v774_v8 = vpop.f32.mrb[8].mxu1 }
 0x121   : > { %v900_v7 = vmax.f32 %v617_v52, %v721_v6  ;;  %v723_v9 = vpop.f32.mrb[9].mxu0  ;;  %v911_v10 = vmax.f32 %v899_v55, %v774_v8  ;;  %v776_v12 = vpop.f32.mrb[9].mxu1 }
 0x122   : > { %v901_v11 = vmax.f32 %v668_v51, %v723_v9  ;;  %v725_v13 = vpop.f32.mrb[10].mxu0  ;;  %v778_v16 = vpop.f32.mrb[10].mxu1 }
 0x123   : > { %v912_v14 = vmax.f32 %v900_v7, %v776_v12  ;;  %v903_v15 = vmax.f32 %v621_v57, %v725_v13  ;;  %v727_v17 = vpop.f32.mrb[11].mxu0  ;;  %v914_v18 = vmax.f32 %v902_v59, %v778_v16  ;;  %v780_v20 = vpop.f32.mrb[11].mxu1 }
 0x124   : > { %v904_v19 = vmax.f32 %v672_v56, %v727_v17 }
 0x125   : > { %v915_v21 = vmax.f32 %v903_v15, %v780_v20 }
 0x128   : > { %v731_v22 = vpop.f32.mrb[12].mxu0  ;;  %v784_v25 = vpop.f32.mrb[12].mxu1 }
 0x129   : > { %v906_v24 = vmax.f32 %v627_v62, %v731_v22  ;;  %v733_v26 = vpop.f32.mrb[13].mxu0  ;;  %v917_v27 = vmax.f32 %v905_v1, %v784_v25  ;;  %v786_v29 = vpop.f32.mrb[13].mxu1 }
 0x12a   : > { %v907_v28 = vmax.f32 %v1535_v61, %v733_v26  ;;  %v735_v30 = vpop.f32.mrb[14].mxu0  ;;  %v788_v33 = vpop.f32.mrb[14].mxu1 }
 0x12b   : > { %v918_v31 = vmax.f32 %v906_v24, %v786_v29  ;;  %v909_v32 = vmax.f32 %v631_v3, %v735_v30  ;;  %v737_v34 = vpop.f32.mrb[15].mxu0  ;;  %v920_v35 = vmax.f32 %v908_v5, %v788_v33  ;;  %v790_v37 = vpop.f32.mrb[15].mxu1 }
 0x12c   : > { %v910_v36 = vmax.f32 %v1537_v2, %v737_v34 }
 0x12d   : > { %v921_v38 = vmax.f32 %v909_v32, %v790_v37 }
 0x130   : > { %v827_v39 = vpop.f32.mrb[16].mxu0  ;;  %v880_v42 = vpop.f32.mrb[16].mxu1 }
 0x131   : > { %v913_v41 = vmax.f32 %v901_v11, %v827_v39  ;;  %v829_v43 = vpop.f32.mrb[17].mxu0  ;;  %v924_v44 = vmax.f32 %v912_v14, %v880_v42  ;;  %v882_v46 = vpop.f32.mrb[17].mxu1 }
 0x132   : > { %v923_v45 = vmax.f32 %v911_v10, %v829_v43  ;;  %v831_v47 = vpop.f32.mrb[18].mxu0  ;;  %v884_v50 = vpop.f32.mrb[18].mxu1 }
 0x133   : > { %v925_v48 = vmax.f32 %v913_v41, %v882_v46  ;;  %v916_v49 = vmax.f32 %v904_v19, %v831_v47  ;;  %v833_v51 = vpop.f32.mrb[19].mxu0  ;;  %v960_v52 = vadd.f32 %v942_v23, %v924_v44  ;;  %v927_v54 = vmax.f32 %v915_v21, %v884_v50  ;;  %v886_v56 = vpop.f32.mrb[19].mxu1 }
 0x134   : > { %v959_v53 = vadd.f32 %v942_v23, %v923_v45  ;;  %v926_v55 = vmax.f32 %v914_v18, %v833_v51  ;;  %v957_v21 = vpop.permute.xlu1 %956 }
 0x135   : > { %v961_v57 = vadd.f32 %v942_v23, %v925_v48  ;;  %v928_v58 = vmax.f32 %v916_v49, %v886_v56  ;;  %v963_v61 = vadd.f32 %v947_v40, %v927_v54 }
 0x136   : > { %v1273_v59 = vpack.c.bf16 %v960_v52, %v959_v53  ;;  %v962_v60 = vadd.f32 %v947_v40, %v926_v55 }
 0x137   : > { %v1274_v62 = vpack.c.bf16 %v961_v57, %v961_v57  ;;  %v964_v63 = vadd.f32 %v947_v40, %v928_v58 }
 0x138   : > { %1011 = vst [vmem:[%s1543_s21] sm:$0xff] %v1273_v59  ;;  %v1275_v1 = vpack.c.bf16 %v963_v61, %v962_v60  ;;  %v837_v2 = vpop.f32.mrb[20].mxu0  ;;  %v890_v5 = vpop.f32.mrb[20].mxu1 }
 0x139   : > { %1012 = vst [vmem:[%s1543_s21 + $0x8] sm:$0xf] %v1274_v62  ;;  %v1276_v3 = vpack.c.bf16 %v964_v63, %v964_v63  ;;  %v919_v4 = vmax.f32 %v907_v28, %v837_v2  ;;  %v839_v6 = vpop.f32.mrb[21].mxu0  ;;  %v930_v7 = vmax.f32 %v918_v31, %v890_v5  ;;  %v892_v9 = vpop.f32.mrb[21].mxu1 }
 0x13a   : > { %1013 = vst [vmem:[%s1543_s21 + $0xc] sm:$0xff] %v1275_v1  ;;  %v929_v8 = vmax.f32 %v917_v27, %v839_v6  ;;  %v841_v10 = vpop.f32.mrb[22].mxu0  ;;  %v894_v13 = vpop.f32.mrb[22].mxu1 }
 0x13b   : > { %1014 = vst [vmem:[%s1543_s21 + $0x14] sm:$0xf] %v1276_v3  ;;  %v931_v11 = vmax.f32 %v919_v4, %v892_v9  ;;  %v922_v12 = vmax.f32 %v910_v36, %v841_v10  ;;  %v843_v14 = vpop.f32.mrb[23].mxu0  ;;  %v966_v15 = vadd.f32 %v952_v0, %v930_v7  ;;  %v933_v17 = vmax.f32 %v921_v38, %v894_v13  ;;  %v896_v19 = vpop.f32.mrb[23].mxu1 }
 0x13c   : > { %v965_v16 = vadd.f32 %v952_v0, %v929_v8  ;;  %v932_v18 = vmax.f32 %v920_v35, %v843_v14 }
 0x13d   : > { %v967_v20 = vadd.f32 %v952_v0, %v931_v11  ;;  %v934_v22 = vmax.f32 %v922_v12, %v896_v19  ;;  %v969_v24 = vadd.f32 %v957_v21, %v933_v17  ;;  %1025 = sbr.rel (!%p1429_p5) target bundleno = 332 (0x14c), region = 152 }
 0x13e   : > { %v1277_v23 = vpack.c.bf16 %v966_v15, %v965_v16  ;;  %v968_v25 = vadd.f32 %v957_v21, %v932_v18 }
 0x13f   : > { %v1278_v26 = vpack.c.bf16 %v967_v20, %v967_v20  ;;  %v970_v27 = vadd.f32 %v957_v21, %v934_v22  ;;  %v1043_v30 = vld [vmem:[%s1543_s21] sm:$0xff] (%p1429_p5) }
 0x140   : > { %1015 = vst [vmem:[%s1543_s21 + $0x18] sm:$0xff] %v1277_v23  ;;  %v1279_v28 = vpack.c.bf16 %v969_v24, %v968_v25  ;;  %v1259_v34 = vld [vmem:[%s1543_s21 + $0x8] sm:$0xf] (%p1429_p5)  ;;  %1044 = vst [vmem:[%s1028_s27] sm:$0xff] (%p1429_p5), %v1043_v30 }
 0x141   : > { %1016 = vst [vmem:[%s1543_s21 + $0x20] sm:$0xf] %v1278_v26  ;;  %v1280_v29 = vpack.c.bf16 %v970_v27, %v970_v27  ;;  %v1045_v31 = vld [vmem:[%s1543_s21 + $0xc] sm:$0xff] (%p1429_p5)  ;;  %1260 = vst [vmem:[%s1028_s27 + $0x8] sm:$0xf] (%p1429_p5), %v1259_v34 }
 0x142   : > { %1017 = vst [vmem:[%s1543_s21 + $0x24] sm:$0xff] %v1279_v28  ;;  %v1261_v35 = vld [vmem:[%s1543_s21 + $0x14] sm:$0xf] (%p1429_p5)  ;;  %1046 = vst [vmem:[%s1028_s27 + $0x18] sm:$0xff] (%p1429_p5), %v1045_v31 }
 0x143   : > { %1018 = vst [vmem:[%s1543_s21 + $0x2c] sm:$0xf] %v1280_v29  ;;  %1262 = vst [vmem:[%s1028_s27 + $0x20] sm:$0xf] (%p1429_p5), %v1261_v35 }
 0x147   : > { %v1047_v32 = vld [vmem:[%s1543_s21 + $0x18] sm:$0xff] }
 0x148   : > { %v1263_v36 = vld [vmem:[%s1543_s21 + $0x20] sm:$0xf]  ;;  %1048 = vst [vmem:[%s1028_s27 + $0x30] sm:$0xff] %v1047_v32 }
 0x149   : > { %v1049_v33 = vld [vmem:[%s1543_s21 + $0x24] sm:$0xff]  ;;  %1264 = vst [vmem:[%s1028_s27 + $0x38] sm:$0xf] %v1263_v36 }
 0x14a   : > { %v1265_v37 = vld [vmem:[%s1543_s21 + $0x2c] sm:$0xf]  ;;  %1050 = vst [vmem:[%s1028_s27 + $0x48] sm:$0xff] %v1049_v33 }
 0x14b   : > { %1266 = vst [vmem:[%s1028_s27 + $0x50] sm:$0xf] %v1265_v37 }
 0x14c PF: > { %p13_p10 = scmp.ge.s32.totalorder %s1412_s25, 4   ;;  %s1587_s21 = smov %s1352_s22 }
 0x14d   : > { %s1588_s22 = smov %s1423_s28  ;;  %s1589_s23 = smov %s1412_s25 }
 0x14e   :  { %15 = sbr.rel (!%p13_p10) target bundleno = 2 (0x2), region = 263 }

// kernel: cnn_forward.5
= control target key start
LH: loop header
LB: loop body
LE: loop exit
PB: predicated region body
PF: predicated region fallthrough
CT: control target
= control target key end

     0   :  { %v901_v1 = vmov 0   ;;  %vm452_vm0 = vcmask 523264   ;;  %s1149_s1 = inlined_call_operand.vmem [shape: bf16[192,128], index: 1, kind: input, shape index: {}]   ;;  %s1150_s3 = inlined_call_operand.vmem [shape: bf16[192,128], index: 3, kind: input, shape index: {}]   ;;  %s1151_s0 = inlined_call_operand.vmem [shape: bf16[192,128], index: 0, kind: input, shape index: {}]   ;;  %s1152_s2 = inlined_call_operand.vmem [shape: bf16[192,128], index: 2, kind: input, shape index: {}]   ;;  %s1153_s4 = inlined_call_operand.vmem [shape: bf16[64,192], index: 4, kind: input, shape index: {}]   ;;  %s1154_s5 = inlined_call_operand.vmem [shape: f32[64,1], index: 5, kind: input, shape index: {}]   ;;  %s1155_s6 = inlined_call_operand.vmem [shape: bf16[64,128], index: 6, kind: output, shape index: {}]  }
   0x1   :  { %v841_v0 = vld [vmem:[%s1149_s1] sm:$0xff]   ;;  %839 = vset.pattern.permute.xlu0 %v901_v1  ;;  %840 = vset.pattern.permute.xlu1 %v901_v1  ;;  %v845_v5 = vld [vmem:[%s1149_s1 + $0x8] sm:$0xff]   ;;  %v849_v9 = vld [vmem:[%s1149_s1 + $0x10] sm:$0xff]  }
   0x2   :  { %v842_v2 = vld [vmem:[%s1150_s3] sm:$0xff]   ;;  %465 = vmatprep.subr.bf16.mxu0 %v841_v0  ;;  %v846_v6 = vld [vmem:[%s1150_s3 + $0x8] sm:$0xff]   ;;  %v850_v10 = vld [vmem:[%s1150_s3 + $0x10] sm:$0xff]  }
   0x3   :  { %v843_v3 = vld [vmem:[%s1151_s0] sm:$0xff]   ;;  %538 = vmatprep.subr.bf16.mxu1 %v842_v2  ;;  %v847_v7 = vld [vmem:[%s1151_s0 + $0x8] sm:$0xff]   ;;  %v851_v11 = vld [vmem:[%s1151_s0 + $0x10] sm:$0xff]  }
   0x4   :  { %v844_v4 = vld [vmem:[%s1152_s2] sm:$0xff]   ;;  %466 = vmatpush1.bf16.msra.mxu0 %v843_v3  ;;  %v848_v8 = vld [vmem:[%s1152_s2 + $0x8] sm:$0xff]   ;;  %v852_v12 = vld [vmem:[%s1152_s2 + $0x10] sm:$0xff]  }
   0x5   :  { %539 = vmatpush1.bf16.msra.mxu1 %v844_v4  ;;  %467 = vmatprep.subr.bf16.mxu0 %v845_v5  ;;  %v853_v13 = vld [vmem:[%s1149_s1 + $0x18] sm:$0xff]   ;;  %v857_v17 = vld [vmem:[%s1149_s1 + $0x20] sm:$0xff]   ;;  %v861_v21 = vld [vmem:[%s1149_s1 + $0x28] sm:$0xff]  }
   0x6   :  { %540 = vmatprep.subr.bf16.mxu1 %v846_v6  ;;  %v854_v14 = vld [vmem:[%s1150_s3 + $0x18] sm:$0xff]   ;;  %v858_v18 = vld [vmem:[%s1150_s3 + $0x20] sm:$0xff]   ;;  %v862_v22 = vld [vmem:[%s1150_s3 + $0x28] sm:$0xff]  }
   0x7   :  { %v855_v15 = vld [vmem:[%s1151_s0 + $0x18] sm:$0xff]   ;;  %v859_v19 = vld [vmem:[%s1151_s0 + $0x20] sm:$0xff]   ;;  %v863_v23 = vld [vmem:[%s1151_s0 + $0x28] sm:$0xff]  }
   0x8   :  { %468 = vmatpush1.bf16.msra.mxu0 %v847_v7  ;;  %v856_v16 = vld [vmem:[%s1152_s2 + $0x18] sm:$0xff]   ;;  %v860_v20 = vld [vmem:[%s1152_s2 + $0x20] sm:$0xff]   ;;  %v864_v24 = vld [vmem:[%s1152_s2 + $0x28] sm:$0xff]  }
   0x9   :  { %541 = vmatpush1.bf16.msra.mxu1 %v848_v8  ;;  %469 = vmatprep.subr.bf16.mxu0 %v849_v9  ;;  %v865_v25 = vld [vmem:[%s1149_s1 + $0x30] sm:$0xff]   ;;  %v869_v29 = vld [vmem:[%s1149_s1 + $0x38] sm:$0xff]   ;;  %v873_v33 = vld [vmem:[%s1149_s1 + $0x40] sm:$0xff]  }
   0xa   :  { %542 = vmatprep.subr.bf16.mxu1 %v850_v10  ;;  %v866_v26 = vld [vmem:[%s1150_s3 + $0x30] sm:$0xff]   ;;  %v870_v30 = vld [vmem:[%s1150_s3 + $0x38] sm:$0xff]   ;;  %v874_v34 = vld [vmem:[%s1150_s3 + $0x40] sm:$0xff]  }
   0xb   :  { %v867_v27 = vld [vmem:[%s1151_s0 + $0x30] sm:$0xff]   ;;  %v871_v31 = vld [vmem:[%s1151_s0 + $0x38] sm:$0xff]   ;;  %v875_v35 = vld [vmem:[%s1151_s0 + $0x40] sm:$0xff]  }
   0xc   :  { %470 = vmatpush1.bf16.msra.mxu0 %v851_v11  ;;  %v868_v28 = vld [vmem:[%s1152_s2 + $0x30] sm:$0xff]   ;;  %v872_v32 = vld [vmem:[%s1152_s2 + $0x38] sm:$0xff]   ;;  %v876_v36 = vld [vmem:[%s1152_s2 + $0x40] sm:$0xff]  }
   0xd   :  { %543 = vmatpush1.bf16.msra.mxu1 %v852_v12  ;;  %471 = vmatprep.subr.bf16.mxu0 %v853_v13  ;;  %v877_v37 = vld [vmem:[%s1149_s1 + $0x48] sm:$0xff]   ;;  %v881_v41 = vld [vmem:[%s1149_s1 + $0x50] sm:$0xff]   ;;  %v885_v45 = vld [vmem:[%s1149_s1 + $0x58] sm:$0xff]  }
   0xe   :  { %544 = vmatprep.subr.bf16.mxu1 %v854_v14  ;;  %v878_v38 = vld [vmem:[%s1150_s3 + $0x48] sm:$0xff]   ;;  %v882_v42 = vld [vmem:[%s1150_s3 + $0x50] sm:$0xff]   ;;  %v886_v46 = vld [vmem:[%s1150_s3 + $0x58] sm:$0xff]  }
   0xf   :  { %v879_v39 = vld [vmem:[%s1151_s0 + $0x48] sm:$0xff]   ;;  %v883_v43 = vld [vmem:[%s1151_s0 + $0x50] sm:$0xff]   ;;  %v887_v47 = vld [vmem:[%s1151_s0 + $0x58] sm:$0xff]  }
  0x10   :  { %472 = vmatpush1.bf16.msra.mxu0 %v855_v15  ;;  %v880_v40 = vld [vmem:[%s1152_s2 + $0x48] sm:$0xff]   ;;  %v884_v44 = vld [vmem:[%s1152_s2 + $0x50] sm:$0xff]   ;;  %v888_v48 = vld [vmem:[%s1152_s2 + $0x58] sm:$0xff]  }
  0x11   :  { %545 = vmatpush1.bf16.msra.mxu1 %v856_v16  ;;  %473 = vmatprep.subr.bf16.mxu0 %v857_v17  ;;  %v889_v49 = vld [vmem:[%s1153_s4] ss:$8 sps:$4 sm:$0xff]   ;;  %v891_v50 = vld [vmem:[%s1153_s4 + $0x4] ss:$8 sps:$4 sm:$0xff]   ;;  %v892_v51 = vld [vmem:[%s1153_s4 + $0x14] ss:$8 sps:$4 sm:$0xff]  }
  0x12   :  { %546 = vmatprep.subr.bf16.mxu1 %v858_v18  ;;  %791 = vmatprep.mubr.msk.bf16.mxu0 %vm452_vm0, %v891_v50  ;;  %v635_v52 = vld [vmem:[%s1154_s5] sm:$0xff]  ;;  %v637_v53 = vld [vmem:[%s1154_s5 + $0x10] sm:$0xff]  ;;  %v636_v54 = vld [vmem:[%s1154_s5 + $0x8] sm:$0xff] }
  0x13   :  { %795 = vmatprep.mubr.msk.bf16.mxu1 %vm452_vm0, %v891_v50  ;;  %645 = vperm.xlu0 %839, %v635_v52   ;;  %v638_v55 = vld [vmem:[%s1154_s5 + $0x18] sm:$0xff]  ;;  %v895_v57 = vld [vmem:[%s1153_s4 + $0x24] ss:$8 sps:$4 sm:$0xff]   ;;  %v641_v61 = vld [vmem:[%s1154_s5 + $0x30] sm:$0xff] }
  0x14   :  { %474 = vmatpush1.bf16.msra.mxu0 %v859_v19  ;;  %655 = vperm.xlu1 %840, %v637_v53   ;;  %v894_v56 = vld [vmem:[%s1153_s4 + $0x10] ss:$8 sps:$4 sm:$0xff]   ;;  %v640_v58 = vld [vmem:[%s1154_s5 + $0x28] sm:$0xff]  ;;  %v639_v59 = vld [vmem:[%s1154_s5 + $0x20] sm:$0xff] }
  0x15   :  { %547 = vmatpush1.bf16.msra.mxu1 %v860_v20  ;;  %475 = vmatprep.subr.bf16.mxu0 %v861_v21  ;;  %v642_v60 = vld [vmem:[%s1154_s5 + $0x38] sm:$0xff]  ;;  %v897_v62 = vld [vmem:[%s1153_s4 + $0x20] ss:$8 sps:$4 sm:$0xff]  }
  0x16   :  { %548 = vmatprep.subr.bf16.mxu1 %v862_v22  ;;  %v898_v63 = vld [vmem:[%s1153_s4 + $0x34] ss:$8 sps:$4 sm:$0xff]   ;;  %v900_v0 = vld [vmem:[%s1153_s4 + $0x30] ss:$8 sps:$4 sm:$0xff]  }
  0x17   :  { %650 = vperm.xlu0 %839, %v636_v54  }
  0x18   :  { %476 = vmatpush1.bf16.msra.mxu0 %v863_v23  ;;  %660 = vperm.xlu1 %840, %v638_v55  }
  0x19   :  { %549 = vmatpush1.bf16.msra.mxu1 %v864_v24  ;;  %477 = vmatprep.subr.bf16.mxu0 %v865_v25 }
  0x1a   :  { %550 = vmatprep.subr.bf16.mxu1 %v866_v26 }
  0x1b   :  { %665 = vperm.xlu0 %839, %v639_v59  }
  0x1c   :  { %478 = vmatpush1.bf16.msra.mxu0 %v867_v27  ;;  %670 = vperm.xlu1 %840, %v640_v58  }
  0x1d   :  { %551 = vmatpush1.bf16.msra.mxu1 %v868_v28  ;;  %479 = vmatprep.subr.bf16.mxu0 %v869_v29 }
  0x1e   :  { %552 = vmatprep.subr.bf16.mxu1 %v870_v30 }
  0x1f   :  { %675 = vperm.xlu0 %839, %v641_v61  }
  0x20   :  { %480 = vmatpush1.bf16.msra.mxu0 %v871_v31  ;;  %680 = vperm.xlu1 %840, %v642_v60  }
  0x21   :  { %553 = vmatpush1.bf16.msra.mxu1 %v872_v32  ;;  %481 = vmatprep.subr.bf16.mxu0 %v873_v33 }
  0x22   :  { %554 = vmatprep.subr.bf16.mxu1 %v874_v34 }
  0x24   :  { %482 = vmatpush1.bf16.msra.mxu0 %v875_v35 }
  0x25   :  { %555 = vmatpush1.bf16.msra.mxu1 %v876_v36  ;;  %483 = vmatprep.subr.bf16.mxu0 %v877_v37 }
  0x26   :  { %556 = vmatprep.subr.bf16.mxu1 %v878_v38 }
  0x28   :  { %484 = vmatpush1.bf16.msra.mxu0 %v879_v39 }
  0x29   :  { %557 = vmatpush1.bf16.msra.mxu1 %v880_v40  ;;  %485 = vmatprep.subr.bf16.mxu0 %v881_v41 }
  0x2a   :  { %558 = vmatprep.subr.bf16.mxu1 %v882_v42 }
  0x2c   :  { %486 = vmatpush1.bf16.msra.mxu0 %v883_v43 }
  0x2d   :  { %559 = vmatpush1.bf16.msra.mxu1 %v884_v44  ;;  %487 = vmatprep.subr.bf16.mxu0 %v885_v45 }
  0x2e   :  { %560 = vmatprep.subr.bf16.mxu1 %v886_v46 }
  0x30   :  { %488 = vmatpush1.bf16.msra.mxu0 %v887_v47 }
  0x31   :  { %561 = vmatpush1.bf16.msra.mxu1 %v888_v48 }
  0x33   :  { %498 = vmatmul.mubr.bf16.vlgmr.msra.gmra.mrb[0].mxu0 %v889_v49 }
  0x34   :  { %571 = vmatmul.mubr.bf16.vlgmr.msra.gmra.mrb[0].mxu1 %v889_v49  ;;  %792 = vmatprep.mubr.msk.bf16.mxu0 %vm452_vm0, %v892_v51 }
  0x35   :  { %796 = vmatprep.mubr.msk.bf16.mxu1 %vm452_vm0, %v892_v51 }
  0x3b   :  { %508 = vmatmul.mubr.bf16.gmra.mrb[4].mxu0 %v894_v56 }
  0x3c   :  { %581 = vmatmul.mubr.bf16.gmra.mrb[4].mxu1 %v894_v56  ;;  %793 = vmatprep.mubr.msk.bf16.mxu0 %vm452_vm0, %v895_v57 }
  0x3d   :  { %797 = vmatprep.mubr.msk.bf16.mxu1 %vm452_vm0, %v895_v57 }
  0x43   :  { %518 = vmatmul.mubr.bf16.gmra.mrb[8].mxu0 %v897_v62 }
  0x44   :  { %591 = vmatmul.mubr.bf16.gmra.mrb[8].mxu1 %v897_v62  ;;  %794 = vmatprep.mubr.msk.bf16.mxu0 %vm452_vm0, %v898_v63 }
  0x45   :  { %798 = vmatprep.mubr.msk.bf16.mxu1 %vm452_vm0, %v898_v63 }
  0x4b   :  { %528 = vmatmul.mubr.bf16.gmra.mrb[12].mxu0 %v900_v0 }
  0x4c   :  { %601 = vmatmul.mubr.bf16.gmra.mrb[12].mxu1 %v900_v0 }
  0x92   :  { %v646_v1 = vpop.permute.xlu0 %645 }
  0x93   :  { %v656_v15 = vpop.permute.xlu1 %655 }
  0x96   :  { %v651_v16 = vpop.permute.xlu0 %650 }
  0x97   :  { %v661_v34 = vpop.permute.xlu1 %660 }
  0x9a   :  { %v666_v53 = vpop.permute.xlu0 %665 }
  0x9b   :  { %v671_v52 = vpop.permute.xlu1 %670 }
 0x106   :  { %v499_v2 = vpop.f32.mrb[0].mxu0 }
 0x107   :  { %v572_v3 = vpop.f32.mrb[0].mxu1  ;;  %v501_v4 = vpop.f32.mrb[1].mxu0 }
 0x108   :  { %v574_v5 = vpop.f32.mrb[1].mxu1  ;;  %v611_v6 = vmax.f32 %v499_v2, %v501_v4  ;;  %v503_v7 = vpop.f32.mrb[2].mxu0 }
 0x109   :  { %v576_v8 = vpop.f32.mrb[2].mxu1  ;;  %v505_v9 = vpop.f32.mrb[3].mxu0 }
 0x10a   :  { %v578_v10 = vpop.f32.mrb[3].mxu1  ;;  %v619_v11 = vmax.f32 %v611_v6, %v572_v3  ;;  %v612_v12 = vmax.f32 %v503_v7, %v505_v9  ;;  %v676_v9 = vpop.permute.xlu0 %675 }
 0x10c   :  { %v627_v13 = vmax.f32 %v619_v11, %v574_v5  ;;  %v620_v14 = vmax.f32 %v612_v12, %v576_v8  ;;  %v681_v8 = vpop.permute.xlu1 %680 }
 0x10e   :  { %v628_v17 = vmax.f32 %v620_v14, %v578_v10  ;;  %v509_v18 = vpop.f32.mrb[4].mxu0  ;;  %v683_v22 = vadd.f32 %v646_v1, %v627_v13 }
 0x10f   :  { %v582_v19 = vpop.f32.mrb[4].mxu1  ;;  %v511_v20 = vpop.f32.mrb[5].mxu0 }
 0x110   :  { %v584_v21 = vpop.f32.mrb[5].mxu1  ;;  %v684_v23 = vadd.f32 %v651_v16, %v628_v17  ;;  %v613_v24 = vmax.f32 %v509_v18, %v511_v20  ;;  %v513_v25 = vpop.f32.mrb[6].mxu0 }
 0x111   :  { %v586_v26 = vpop.f32.mrb[6].mxu1  ;;  %v515_v27 = vpop.f32.mrb[7].mxu0 }
 0x112   :  { %v588_v28 = vpop.f32.mrb[7].mxu1  ;;  %v818_v29 = vpack.c.bf16 %v684_v23, %v683_v22  ;;  %v621_v30 = vmax.f32 %v613_v24, %v582_v19  ;;  %v614_v31 = vmax.f32 %v513_v25, %v515_v27 }
 0x114   :  { %819 = vst [vmem:[%s1155_s6] sm:$0xff] %v818_v29   ;;  %v629_v32 = vmax.f32 %v621_v30, %v584_v21  ;;  %v622_v33 = vmax.f32 %v614_v31, %v586_v26 }
 0x116   :  { %v630_v35 = vmax.f32 %v622_v33, %v588_v28  ;;  %v519_v36 = vpop.f32.mrb[8].mxu0  ;;  %v685_v40 = vadd.f32 %v656_v15, %v629_v32 }
 0x117   :  { %v592_v37 = vpop.f32.mrb[8].mxu1  ;;  %v521_v38 = vpop.f32.mrb[9].mxu0 }
 0x118   :  { %v594_v39 = vpop.f32.mrb[9].mxu1  ;;  %v686_v41 = vadd.f32 %v661_v34, %v630_v35  ;;  %v615_v42 = vmax.f32 %v519_v36, %v521_v38  ;;  %v523_v43 = vpop.f32.mrb[10].mxu0 }
 0x119   :  { %v596_v44 = vpop.f32.mrb[10].mxu1  ;;  %v525_v45 = vpop.f32.mrb[11].mxu0 }
 0x11a   :  { %v598_v46 = vpop.f32.mrb[11].mxu1  ;;  %v823_v47 = vpack.c.bf16 %v686_v41, %v685_v40  ;;  %v623_v48 = vmax.f32 %v615_v42, %v592_v37  ;;  %v616_v49 = vmax.f32 %v523_v43, %v525_v45 }
 0x11c   :  { %835 = vst [vmem:[%s1155_s6 + $0x8] sm:$0xff] %v823_v47   ;;  %v631_v50 = vmax.f32 %v623_v48, %v594_v39  ;;  %v624_v51 = vmax.f32 %v616_v49, %v596_v44 }
 0x11e   :  { %v632_v54 = vmax.f32 %v624_v51, %v598_v46  ;;  %v529_v55 = vpop.f32.mrb[12].mxu0  ;;  %v687_v59 = vadd.f32 %v666_v53, %v631_v50 }
 0x11f   :  { %v602_v56 = vpop.f32.mrb[12].mxu1  ;;  %v531_v57 = vpop.f32.mrb[13].mxu0 }
 0x120   :  { %v604_v58 = vpop.f32.mrb[13].mxu1  ;;  %v688_v60 = vadd.f32 %v671_v52, %v632_v54  ;;  %v617_v61 = vmax.f32 %v529_v55, %v531_v57  ;;  %v533_v62 = vpop.f32.mrb[14].mxu0 }
 0x121   :  { %v606_v63 = vpop.f32.mrb[14].mxu1  ;;  %v535_v0 = vpop.f32.mrb[15].mxu0 }
 0x122   :  { %v608_v1 = vpop.f32.mrb[15].mxu1  ;;  %v828_v2 = vpack.c.bf16 %v688_v60, %v687_v59  ;;  %v625_v3 = vmax.f32 %v617_v61, %v602_v56  ;;  %v618_v4 = vmax.f32 %v533_v62, %v535_v0 }
 0x124   :  { %836 = vst [vmem:[%s1155_s6 + $0x10] sm:$0xff] %v828_v2   ;;  %v633_v5 = vmax.f32 %v625_v3, %v604_v58  ;;  %v626_v6 = vmax.f32 %v618_v4, %v606_v63 }
 0x126   :  { %v634_v7 = vmax.f32 %v626_v6, %v608_v1  ;;  %v689_v10 = vadd.f32 %v676_v9, %v633_v5 }
 0x128   :  { %v690_v11 = vadd.f32 %v681_v8, %v634_v7 }
 0x12a   :  { %v833_v12 = vpack.c.bf16 %v690_v11, %v689_v10 }
 0x12c   :  { %837 = vst [vmem:[%s1155_s6 + $0x18] sm:$0xff] %v833_v12  }

// kernel: cnn_forward.6
= control target key start
LH: loop header
LB: loop body
LE: loop exit
PB: predicated region body
PF: predicated region fallthrough
CT: control target
= control target key end

     0   :  { %v750_v1 = vmov 0   ;;  %s948_s0 = inlined_call_operand.vmem [shape: bf16[256,128], index: 0, kind: input, shape index: {}]   ;;  %s949_s1 = inlined_call_operand.vmem [shape: bf16[128,256], index: 1, kind: input, shape index: {}]   ;;  %s950_s2 = inlined_call_operand.vmem [shape: f32[128,1], index: 2, kind: input, shape index: {}]   ;;  %s951_s3 = inlined_call_operand.vmem [shape: bf16[128,128], index: 3, kind: output, shape index: {}]  }
   0x1   :  { %v710_v0 = vld [vmem:[%s948_s0 + $0x40] sm:$0xff]   ;;  %709 = vset.pattern.permute.xlu1 %v750_v1  ;;  %708 = vset.pattern.permute.xlu0 %v750_v1  ;;  %v712_v3 = vld [vmem:[%s948_s0 + $0x48] sm:$0xff]   ;;  %v714_v5 = vld [vmem:[%s948_s0 + $0x50] sm:$0xff]  }
   0x2   :  { %v711_v2 = vld [vmem:[%s948_s0] sm:$0xff]   ;;  %627 = vmatprep.subr.bf16.mxu0 %v710_v0  ;;  %691 = vmatprep.subr.bf16.mxu1 %v710_v0  ;;  %v713_v4 = vld [vmem:[%s948_s0 + $0x8] sm:$0xff]   ;;  %v715_v6 = vld [vmem:[%s948_s0 + $0x10] sm:$0xff]  }
   0x3   :  { %628 = vmatpush3.bf16.msra.mxu0 %v711_v2  ;;  %699 = vmatpush3.bf16.msra.mxu1 %v711_v2  ;;  %v716_v7 = vld [vmem:[%s948_s0 + $0x58] sm:$0xff]   ;;  %v718_v9 = vld [vmem:[%s948_s0 + $0x60] sm:$0xff]   ;;  %v720_v11 = vld [vmem:[%s948_s0 + $0x68] sm:$0xff]  }
   0x4   :  { %629 = vmatprep.subr.bf16.mxu0 %v712_v3  ;;  %692 = vmatprep.subr.bf16.mxu1 %v712_v3  ;;  %v717_v8 = vld [vmem:[%s948_s0 + $0x18] sm:$0xff]   ;;  %v719_v10 = vld [vmem:[%s948_s0 + $0x20] sm:$0xff]   ;;  %v721_v14 = vld [vmem:[%s948_s0 + $0x28] sm:$0xff]  }
   0x5   :  { %v728_v12 = vld [vmem:[%s949_s1 + $0x4] ss:$8 sps:$4 sm:$0xff]   ;;  %v722_v15 = vld [vmem:[%s948_s0 + $0x70] sm:$0xff]   ;;  %v724_v17 = vld [vmem:[%s948_s0 + $0x78] sm:$0xff]  }
   0x6   :  { %v731_v13 = vld [vmem:[%s949_s1 + $0x44] ss:$8 sps:$4 sm:$0xff]   ;;  %367 = vmatprep.mubr.bf16.mxu0 %v728_v12  ;;  %v723_v16 = vld [vmem:[%s948_s0 + $0x30] sm:$0xff]   ;;  %v725_v19 = vld [vmem:[%s948_s0 + $0x38] sm:$0xff]  }
   0x7   :  { %630 = vmatpush3.bf16.msra.mxu0 %v713_v4  ;;  %700 = vmatpush3.bf16.msra.mxu1 %v713_v4  ;;  %v65_v18 = vld [vmem:[%s950_s2 + $0x10] sm:$0xff]  ;;  %v63_v20 = vld [vmem:[%s950_s2] sm:$0xff]  ;;  %v66_v23 = vld [vmem:[%s950_s2 + $0x18] sm:$0xff] }
   0x8   :  { %631 = vmatprep.subr.bf16.mxu0 %v714_v5  ;;  %693 = vmatprep.subr.bf16.mxu1 %v714_v5  ;;  %v726_v21 = vld [vmem:[%s949_s1] ss:$8 sps:$4 sm:$0xff]   ;;  %v732_v25 = vld [vmem:[%s949_s1 + $0x14] ss:$8 sps:$4 sm:$0xff]   ;;  %v736_v29 = vld [vmem:[%s949_s1 + $0x10] ss:$8 sps:$4 sm:$0xff]  }
   0x9   :  { %399 = vmatprep.mubr.bf16.mxu1 %v731_v13  ;;  %91 = vperm.xlu1 %709, %v65_v18   ;;  %v729_v22 = vld [vmem:[%s949_s1 + $0x40] ss:$8 sps:$4 sm:$0xff]   ;;  %v734_v26 = vld [vmem:[%s949_s1 + $0x54] ss:$8 sps:$4 sm:$0xff]   ;;  %v737_v30 = vld [vmem:[%s949_s1 + $0x50] ss:$8 sps:$4 sm:$0xff]  }
   0xa   :  { %81 = vperm.xlu0 %708, %v63_v20   ;;  %v64_v24 = vld [vmem:[%s950_s2 + $0x8] sm:$0xff]  ;;  %v67_v28 = vld [vmem:[%s950_s2 + $0x20] sm:$0xff]  ;;  %v70_v31 = vld [vmem:[%s950_s2 + $0x38] sm:$0xff] }
   0xb   :  { %632 = vmatpush3.bf16.msra.mxu0 %v715_v6  ;;  %701 = vmatpush3.bf16.msra.mxu1 %v715_v6  ;;  %v68_v27 = vld [vmem:[%s950_s2 + $0x28] sm:$0xff]  ;;  %v69_v32 = vld [vmem:[%s950_s2 + $0x30] sm:$0xff]  ;;  %v71_v36 = vld [vmem:[%s950_s2 + $0x40] sm:$0xff] }
   0xc   :  { %633 = vmatprep.subr.bf16.mxu0 %v716_v7  ;;  %694 = vmatprep.subr.bf16.mxu1 %v716_v7  ;;  %v738_v33 = vld [vmem:[%s949_s1 + $0x24] ss:$8 sps:$4 sm:$0xff]   ;;  %v742_v37 = vld [vmem:[%s949_s1 + $0x20] ss:$8 sps:$4 sm:$0xff]   ;;  %v74_v39 = vld [vmem:[%s950_s2 + $0x58] sm:$0xff] }
   0xd   :  { %96 = vperm.xlu1 %709, %v66_v23   ;;  %v740_v34 = vld [vmem:[%s949_s1 + $0x64] ss:$8 sps:$4 sm:$0xff]   ;;  %v743_v38 = vld [vmem:[%s949_s1 + $0x60] ss:$8 sps:$4 sm:$0xff]   ;;  %v73_v40 = vld [vmem:[%s950_s2 + $0x50] sm:$0xff] }
   0xe   :  { %86 = vperm.xlu0 %708, %v64_v24   ;;  %v72_v35 = vld [vmem:[%s950_s2 + $0x48] sm:$0xff]  ;;  %v744_v41 = vld [vmem:[%s949_s1 + $0x34] ss:$8 sps:$4 sm:$0xff]   ;;  %v75_v44 = vld [vmem:[%s950_s2 + $0x60] sm:$0xff] }
   0xf   :  { %634 = vmatpush3.bf16.msra.mxu0 %v717_v8  ;;  %702 = vmatpush3.bf16.msra.mxu1 %v717_v8  ;;  %v746_v42 = vld [vmem:[%s949_s1 + $0x74] ss:$8 sps:$4 sm:$0xff]   ;;  %v76_v43 = vld [vmem:[%s950_s2 + $0x68] sm:$0xff]  ;;  %v748_v45 = vld [vmem:[%s949_s1 + $0x30] ss:$8 sps:$4 sm:$0xff]  }
  0x10   :  { %635 = vmatprep.subr.bf16.mxu0 %v718_v9  ;;  %695 = vmatprep.subr.bf16.mxu1 %v718_v9  ;;  %v749_v46 = vld [vmem:[%s949_s1 + $0x70] ss:$8 sps:$4 sm:$0xff]  }
  0x11   :  { %106 = vperm.xlu1 %709, %v68_v27   ;;  %v78_v47 = vld [vmem:[%s950_s2 + $0x78] sm:$0xff]  ;;  %v77_v48 = vld [vmem:[%s950_s2 + $0x70] sm:$0xff] }
  0x12   :  { %101 = vperm.xlu0 %708, %v67_v28  }
  0x13   :  { %636 = vmatpush3.bf16.msra.mxu0 %v719_v10  ;;  %703 = vmatpush3.bf16.msra.mxu1 %v719_v10 }
  0x14   :  { %637 = vmatprep.subr.bf16.mxu0 %v720_v11  ;;  %696 = vmatprep.subr.bf16.mxu1 %v720_v11 }
  0x15   :  { %116 = vperm.xlu1 %709, %v70_v31  }
  0x16   :  { %111 = vperm.xlu0 %708, %v69_v32  }
  0x17   :  { %638 = vmatpush3.bf16.msra.mxu0 %v721_v14  ;;  %704 = vmatpush3.bf16.msra.mxu1 %v721_v14 }
  0x18   :  { %639 = vmatprep.subr.bf16.mxu0 %v722_v15  ;;  %697 = vmatprep.subr.bf16.mxu1 %v722_v15 }
  0x19   :  { %126 = vperm.xlu1 %709, %v72_v35  }
  0x1a   :  { %121 = vperm.xlu0 %708, %v71_v36  }
  0x1b   :  { %640 = vmatpush3.bf16.msra.mxu0 %v723_v16  ;;  %705 = vmatpush3.bf16.msra.mxu1 %v723_v16 }
  0x1c   :  { %641 = vmatprep.subr.bf16.mxu0 %v724_v17  ;;  %698 = vmatprep.subr.bf16.mxu1 %v724_v17 }
  0x1d   :  { %136 = vperm.xlu1 %709, %v74_v39  }
  0x1e   :  { %131 = vperm.xlu0 %708, %v73_v40  }
  0x1f   :  { %642 = vmatpush3.bf16.msra.mxu0 %v725_v19  ;;  %706 = vmatpush3.bf16.msra.mxu1 %v725_v19 }
  0x21   :  { %146 = vperm.xlu1 %709, %v76_v43  }
  0x22   :  { %368 = vmatmul.mubr.bf16.vlgmr.msra.gmra.mrb[0].mxu0 %v726_v21  ;;  %400 = vmatmul.mubr.bf16.vlgmr.msra.gmra.mrb[0].mxu1 %v729_v22 }
  0x23   :  { %375 = vmatprep.mubr.bf16.mxu0 %v732_v25  ;;  %407 = vmatprep.mubr.bf16.mxu1 %v734_v26 }
  0x24   :  { %141 = vperm.xlu0 %708, %v75_v44  }
  0x25   :  { %156 = vperm.xlu1 %709, %v78_v47  }
  0x28   :  { %151 = vperm.xlu0 %708, %v77_v48  }
  0x2a   :  { %376 = vmatmul.mubr.bf16.gmra.mrb[4].mxu0 %v736_v29  ;;  %408 = vmatmul.mubr.bf16.gmra.mrb[4].mxu1 %v737_v30 }
  0x2b   :  { %383 = vmatprep.mubr.bf16.mxu0 %v738_v33  ;;  %415 = vmatprep.mubr.bf16.mxu1 %v740_v34 }
  0x32   :  { %384 = vmatmul.mubr.bf16.gmra.mrb[8].mxu0 %v742_v37  ;;  %416 = vmatmul.mubr.bf16.gmra.mrb[8].mxu1 %v743_v38 }
  0x33   :  { %391 = vmatprep.mubr.bf16.mxu0 %v744_v41  ;;  %423 = vmatprep.mubr.bf16.mxu1 %v746_v42 }
  0x3a   :  { %392 = vmatmul.mubr.bf16.gmra.mrb[12].mxu0 %v748_v45  ;;  %424 = vmatmul.mubr.bf16.gmra.mrb[12].mxu1 %v749_v46 }
  0x88   :  { %v92_v49 = vpop.permute.xlu1 %91 }
  0x89   :  { %v82_v50 = vpop.permute.xlu0 %81 }
  0x8c   :  { %v97_v51 = vpop.permute.xlu1 %96 }
  0x8d   :  { %v87_v52 = vpop.permute.xlu0 %86 }
  0x90   :  { %v915_v53 = vpop.permute.xlu1 %106 }
  0x91   :  { %v102_v54 = vpop.permute.xlu0 %101 }
  0x94   :  { %v917_v55 = vpop.permute.xlu1 %116 }
  0x95   :  { %v919_v56 = vpop.permute.xlu0 %111 }
  0x98   :  { %v127_v5 = vpop.permute.xlu1 %126 }
  0x99   :  { %v122_v6 = vpop.permute.xlu0 %121 }
  0x9c   :  { %v137_v25 = vpop.permute.xlu1 %136 }
  0x9d   :  { %v132_v26 = vpop.permute.xlu0 %131 }
  0xa0   :  { %v147_v45 = vpop.permute.xlu1 %146 }
  0xa3   :  { %v142_v46 = vpop.permute.xlu0 %141 }
  0xf5   :  { %v643_v57 = vpop.f32.mrb[0].mxu0  ;;  %v667_v58 = vpop.f32.mrb[0].mxu1 }
  0xf6   :  { %v644_v59 = vpop.f32.mrb[1].mxu0  ;;  %v668_v60 = vpop.f32.mrb[1].mxu1 }
  0xf7   :  { %v645_v61 = vadd.f32 %v644_v59, %v643_v57  ;;  %v669_v62 = vadd.f32 %v668_v60, %v667_v58  ;;  %v646_v63 = vpop.f32.mrb[2].mxu0  ;;  %v670_v0 = vpop.f32.mrb[2].mxu1 }
  0xf8   :  { %v647_v1 = vpop.f32.mrb[3].mxu0  ;;  %v671_v2 = vpop.f32.mrb[3].mxu1 }
  0xf9   :  { %v648_v3 = vadd.f32 %v647_v1, %v646_v63  ;;  %v672_v4 = vadd.f32 %v671_v2, %v670_v0  ;;  %v370_v7 = vadd.f32 %v645_v61, %v82_v50  ;;  %v402_v8 = vadd.f32 %v669_v62, %v122_v6 }
  0xfb   :  { %v373_v9 = vadd.f32 %v648_v3, %v87_v52  ;;  %v405_v10 = vadd.f32 %v672_v4, %v127_v5  ;;  %v157_v3 = vpop.permute.xlu1 %156  ;;  %v152_v4 = vpop.permute.xlu0 %151 }
  0xfd   :  { %v583_v11 = vpack.c.bf16 %v373_v9, %v370_v7  ;;  %v603_v12 = vpack.c.bf16 %v405_v10, %v402_v8  ;;  %v649_v13 = vpop.f32.mrb[4].mxu0  ;;  %v673_v14 = vpop.f32.mrb[4].mxu1 }
  0xfe   :  { %v650_v15 = vpop.f32.mrb[5].mxu0  ;;  %v674_v16 = vpop.f32.mrb[5].mxu1 }
  0xff   :  { %584 = vst [vmem:[%s951_s3] sm:$0xff] %v583_v11   ;;  %623 = vst [vmem:[%s951_s3 + $0x20] sm:$0xff] %v603_v12   ;;  %v651_v17 = vadd.f32 %v650_v15, %v649_v13  ;;  %v675_v18 = vadd.f32 %v674_v16, %v673_v14  ;;  %v652_v19 = vpop.f32.mrb[6].mxu0  ;;  %v676_v20 = vpop.f32.mrb[6].mxu1 }
 0x100   :  { %v653_v21 = vpop.f32.mrb[7].mxu0  ;;  %v677_v22 = vpop.f32.mrb[7].mxu1 }
 0x101   :  { %v654_v23 = vadd.f32 %v653_v21, %v652_v19  ;;  %v678_v24 = vadd.f32 %v677_v22, %v676_v20  ;;  %v378_v27 = vadd.f32 %v651_v17, %v92_v49  ;;  %v410_v28 = vadd.f32 %v675_v18, %v132_v26 }
 0x103   :  { %v381_v29 = vadd.f32 %v654_v23, %v97_v51  ;;  %v413_v30 = vadd.f32 %v678_v24, %v137_v25 }
 0x105   :  { %v588_v31 = vpack.c.bf16 %v381_v29, %v378_v27  ;;  %v608_v32 = vpack.c.bf16 %v413_v30, %v410_v28  ;;  %v655_v33 = vpop.f32.mrb[8].mxu0  ;;  %v679_v34 = vpop.f32.mrb[8].mxu1 }
 0x106   :  { %v656_v35 = vpop.f32.mrb[9].mxu0  ;;  %v680_v36 = vpop.f32.mrb[9].mxu1 }
 0x107   :  { %620 = vst [vmem:[%s951_s3 + $0x8] sm:$0xff] %v588_v31   ;;  %624 = vst [vmem:[%s951_s3 + $0x28] sm:$0xff] %v608_v32   ;;  %v657_v37 = vadd.f32 %v656_v35, %v655_v33  ;;  %v681_v38 = vadd.f32 %v680_v36, %v679_v34  ;;  %v658_v39 = vpop.f32.mrb[10].mxu0  ;;  %v682_v40 = vpop.f32.mrb[10].mxu1 }
 0x108   :  { %v659_v41 = vpop.f32.mrb[11].mxu0  ;;  %v683_v42 = vpop.f32.mrb[11].mxu1 }
 0x109   :  { %v660_v43 = vadd.f32 %v659_v41, %v658_v39  ;;  %v684_v44 = vadd.f32 %v683_v42, %v682_v40  ;;  %v386_v47 = vadd.f32 %v657_v37, %v102_v54  ;;  %v418_v48 = vadd.f32 %v681_v38, %v142_v46 }
 0x10b   :  { %v389_v49 = vadd.f32 %v660_v43, %v915_v53  ;;  %v421_v50 = vadd.f32 %v684_v44, %v147_v45 }
 0x10d   :  { %v593_v51 = vpack.c.bf16 %v389_v49, %v386_v47  ;;  %v613_v52 = vpack.c.bf16 %v421_v50, %v418_v48  ;;  %v661_v57 = vpop.f32.mrb[12].mxu0  ;;  %v685_v58 = vpop.f32.mrb[12].mxu1 }
 0x10e   :  { %v662_v59 = vpop.f32.mrb[13].mxu0  ;;  %v686_v60 = vpop.f32.mrb[13].mxu1 }
 0x10f   :  { %621 = vst [vmem:[%s951_s3 + $0x10] sm:$0xff] %v593_v51   ;;  %625 = vst [vmem:[%s951_s3 + $0x30] sm:$0xff] %v613_v52   ;;  %v663_v61 = vadd.f32 %v662_v59, %v661_v57  ;;  %v687_v54 = vadd.f32 %v686_v60, %v685_v58  ;;  %v664_v62 = vpop.f32.mrb[14].mxu0  ;;  %v688_v63 = vpop.f32.mrb[14].mxu1 }
 0x110   :  { %v665_v53 = vpop.f32.mrb[15].mxu0  ;;  %v689_v0 = vpop.f32.mrb[15].mxu1 }
 0x111   :  { %v666_v1 = vadd.f32 %v665_v53, %v664_v62  ;;  %v690_v2 = vadd.f32 %v689_v0, %v688_v63  ;;  %v394_v5 = vadd.f32 %v663_v61, %v919_v56  ;;  %v426_v6 = vadd.f32 %v687_v54, %v152_v4 }
 0x113   :  { %v397_v7 = vadd.f32 %v666_v1, %v917_v55  ;;  %v429_v8 = vadd.f32 %v690_v2, %v157_v3 }
 0x115   :  { %v598_v9 = vpack.c.bf16 %v397_v7, %v394_v5  ;;  %v618_v10 = vpack.c.bf16 %v429_v8, %v426_v6 }
 0x117   :  { %622 = vst [vmem:[%s951_s3 + $0x18] sm:$0xff] %v598_v9   ;;  %626 = vst [vmem:[%s951_s3 + $0x38] sm:$0xff] %v618_v10  }

// kernel: cnn_forward.7
= control target key start
LH: loop header
LB: loop body
LE: loop exit
PB: predicated region body
PF: predicated region fallthrough
CT: control target
= control target key end

     0   :  { %s5760_s1 = inlined_call_operand.vmem [shape: bf16[5120,128], index: 1, kind: input, shape index: {}]   ;;  %s5761_s0 = inlined_call_operand.vmem [shape: bf16[8,5120], index: 0, kind: input, shape index: {}]   ;;  %s5762_s2 = inlined_call_operand.vmem [shape: f32[1,128], index: 2, kind: input, shape index: {}]   ;;  %s5763_s3 = inlined_call_operand.vmem [shape: f32[8,128], index: 3, kind: output, shape index: {}]  }
   0x1   :  { %v4348_v0 = vld [vmem:[%s5760_s1 + $0x40] sm:$0xff]   ;;  %v4352_v4 = vld [vmem:[%s5760_s1 + $0x48] sm:$0xff]   ;;  %v4356_v8 = vld [vmem:[%s5760_s1 + $0x50] sm:$0xff]  }
   0x2   :  { %v4349_v1 = vld [vmem:[%s5760_s1 + $0xc0] sm:$0xff]   ;;  %3908 = vmatprep.subr.bf16.mxu0 %v4348_v0  ;;  %v4353_v5 = vld [vmem:[%s5760_s1 + $0xc8] sm:$0xff]   ;;  %v4357_v9 = vld [vmem:[%s5760_s1 + $0xd0] sm:$0xff]  }
   0x3   :  { %v4350_v2 = vld [vmem:[%s5760_s1] sm:$0xff]   ;;  %3930 = vmatprep.subr.bf16.mxu1 %v4349_v1  ;;  %v4354_v6 = vld [vmem:[%s5760_s1 + $0x8] sm:$0xff]   ;;  %v4358_v10 = vld [vmem:[%s5760_s1 + $0x10] sm:$0xff]  }
   0x4   :  { %v4351_v3 = vld [vmem:[%s5760_s1 + $0x80] sm:$0xff]   ;;  %3909 = vmatpush3.bf16.msra.mxu0 %v4350_v2  ;;  %v4355_v7 = vld [vmem:[%s5760_s1 + $0x88] sm:$0xff]   ;;  %v4359_v11 = vld [vmem:[%s5760_s1 + $0x90] sm:$0xff]  }
   0x5   :  { %3931 = vmatpush3.bf16.msra.mxu1 %v4351_v3  ;;  %3910 = vmatprep.subr.bf16.mxu0 %v4352_v4  ;;  %v4360_v12 = vld [vmem:[%s5760_s1 + $0x58] sm:$0xff]   ;;  %v4364_v16 = vld [vmem:[%s5760_s1 + $0x60] sm:$0xff]   ;;  %v4368_v20 = vld [vmem:[%s5760_s1 + $0x68] sm:$0xff]  }
   0x6   :  { %3932 = vmatprep.subr.bf16.mxu1 %v4353_v5  ;;  %v4361_v13 = vld [vmem:[%s5760_s1 + $0xd8] sm:$0xff]   ;;  %v4365_v17 = vld [vmem:[%s5760_s1 + $0xe0] sm:$0xff]   ;;  %v4369_v21 = vld [vmem:[%s5760_s1 + $0xe8] sm:$0xff]  }
   0x7   :  { %v4362_v14 = vld [vmem:[%s5760_s1 + $0x18] sm:$0xff]   ;;  %v4366_v18 = vld [vmem:[%s5760_s1 + $0x20] sm:$0xff]   ;;  %v4370_v22 = vld [vmem:[%s5760_s1 + $0x28] sm:$0xff]  }
   0x8   :  { %3911 = vmatpush3.bf16.msra.mxu0 %v4354_v6  ;;  %v4363_v15 = vld [vmem:[%s5760_s1 + $0x98] sm:$0xff]   ;;  %v4367_v19 = vld [vmem:[%s5760_s1 + $0xa0] sm:$0xff]   ;;  %v4371_v23 = vld [vmem:[%s5760_s1 + $0xa8] sm:$0xff]  }
   0x9   :  { %3933 = vmatpush3.bf16.msra.mxu1 %v4355_v7  ;;  %3912 = vmatprep.subr.bf16.mxu0 %v4356_v8  ;;  %v4372_v24 = vld [vmem:[%s5760_s1 + $0x70] sm:$0xff]   ;;  %v4376_v28 = vld [vmem:[%s5760_s1 + $0x78] sm:$0xff]   ;;  %v15_v32 = vld [vmem:[%s5761_s0] sm:$0xff] }
   0xa   :  { %3934 = vmatprep.subr.bf16.mxu1 %v4357_v9  ;;  %v4373_v25 = vld [vmem:[%s5760_s1 + $0xf0] sm:$0xff]   ;;  %v4377_v29 = vld [vmem:[%s5760_s1 + $0xf8] sm:$0xff]   ;;  %v16_v33 = vld [vmem:[%s5761_s0 + $0x8] sm:$0xff]  ;;  %v3548_v34 = vcombine.low %v15_v32, %v15_v32  ;;  %v3549_v35 = vcombine.high %v15_v32, %v15_v32 }
   0xb   :  { %v4374_v26 = vld [vmem:[%s5760_s1 + $0x30] sm:$0xff]   ;;  %v4378_v30 = vld [vmem:[%s5760_s1 + $0x38] sm:$0xff]   ;;  %v3550_v36 = vcombine.low %v16_v33, %v16_v33  ;;  %v3551_v37 = vcombine.high %v16_v33, %v16_v33  ;;  %v4384_v38 = vld [vmem:[%s5760_s1 + $0x140] sm:$0xff]  }
   0xc   :  { %3913 = vmatpush3.bf16.msra.mxu0 %v4358_v10  ;;  %v4375_v27 = vld [vmem:[%s5760_s1 + $0xb0] sm:$0xff]   ;;  %v4379_v31 = vld [vmem:[%s5760_s1 + $0xb8] sm:$0xff]   ;;  %v4385_v39 = vld [vmem:[%s5760_s1 + $0x1c0] sm:$0xff]   ;;  %2774 = vmatprep.mubr.bf16.mxu0 %v3549_v35 }
   0xd   :  { %3935 = vmatpush3.bf16.msra.mxu1 %v4359_v11  ;;  %3914 = vmatprep.subr.bf16.mxu0 %v4360_v12  ;;  %v4386_v40 = vld [vmem:[%s5760_s1 + $0x100] sm:$0xff]   ;;  %v4388_v42 = vld [vmem:[%s5760_s1 + $0x148] sm:$0xff]   ;;  %v4392_v46 = vld [vmem:[%s5760_s1 + $0x150] sm:$0xff]  }
   0xe   :  { %3936 = vmatprep.subr.bf16.mxu1 %v4361_v13  ;;  %2814 = vmatprep.mubr.bf16.mxu1 %v3551_v37  ;;  %v4387_v41 = vld [vmem:[%s5760_s1 + $0x180] sm:$0xff]   ;;  %v4389_v43 = vld [vmem:[%s5760_s1 + $0x1c8] sm:$0xff]   ;;  %v4393_v47 = vld [vmem:[%s5760_s1 + $0x1d0] sm:$0xff]  }
   0xf   :  { %v4390_v44 = vld [vmem:[%s5760_s1 + $0x108] sm:$0xff]   ;;  %v4394_v48 = vld [vmem:[%s5760_s1 + $0x110] sm:$0xff]   ;;  %v4396_v50 = vld [vmem:[%s5760_s1 + $0x158] sm:$0xff]  }
  0x10   :  { %3915 = vmatpush3.bf16.msra.mxu0 %v4362_v14  ;;  %v4391_v45 = vld [vmem:[%s5760_s1 + $0x188] sm:$0xff]   ;;  %v4395_v49 = vld [vmem:[%s5760_s1 + $0x190] sm:$0xff]   ;;  %v4397_v51 = vld [vmem:[%s5760_s1 + $0x1d8] sm:$0xff]  }
  0x11   :  { %3937 = vmatpush3.bf16.msra.mxu1 %v4363_v15  ;;  %3916 = vmatprep.subr.bf16.mxu0 %v4364_v16  ;;  %v4398_v52 = vld [vmem:[%s5760_s1 + $0x118] sm:$0xff]   ;;  %v4400_v54 = vld [vmem:[%s5760_s1 + $0x160] sm:$0xff]   ;;  %v4404_v58 = vld [vmem:[%s5760_s1 + $0x168] sm:$0xff]  }
  0x12   :  { %3938 = vmatprep.subr.bf16.mxu1 %v4365_v17  ;;  %v4399_v53 = vld [vmem:[%s5760_s1 + $0x198] sm:$0xff]   ;;  %v4401_v55 = vld [vmem:[%s5760_s1 + $0x1e0] sm:$0xff]   ;;  %v4405_v59 = vld [vmem:[%s5760_s1 + $0x1e8] sm:$0xff]  }
  0x13   :  { %v4402_v56 = vld [vmem:[%s5760_s1 + $0x120] sm:$0xff]   ;;  %v4406_v60 = vld [vmem:[%s5760_s1 + $0x128] sm:$0xff]   ;;  %v4408_v62 = vld [vmem:[%s5760_s1 + $0x170] sm:$0xff]  }
  0x14   :  { %3917 = vmatpush3.bf16.msra.mxu0 %v4366_v18  ;;  %v4403_v57 = vld [vmem:[%s5760_s1 + $0x1a0] sm:$0xff]   ;;  %v4407_v61 = vld [vmem:[%s5760_s1 + $0x1a8] sm:$0xff]   ;;  %v4409_v63 = vld [vmem:[%s5760_s1 + $0x1f0] sm:$0xff]  }
  0x15   :  { %3939 = vmatpush3.bf16.msra.mxu1 %v4367_v19  ;;  %3918 = vmatprep.subr.bf16.mxu0 %v4368_v20  ;;  %v4410_v0 = vld [vmem:[%s5760_s1 + $0x130] sm:$0xff]   ;;  %v4412_v2 = vld [vmem:[%s5760_s1 + $0x178] sm:$0xff]   ;;  %v4420_v12 = vld [vmem:[%s5760_s1 + $0x240] sm:$0xff]  }
  0x16   :  { %3940 = vmatprep.subr.bf16.mxu1 %v4369_v21  ;;  %v4411_v1 = vld [vmem:[%s5760_s1 + $0x1b0] sm:$0xff]   ;;  %v4413_v3 = vld [vmem:[%s5760_s1 + $0x1f8] sm:$0xff]   ;;  %v4421_v13 = vld [vmem:[%s5760_s1 + $0x2c0] sm:$0xff]  }
  0x17   :  { %v4414_v4 = vld [vmem:[%s5760_s1 + $0x138] sm:$0xff]   ;;  %v17_v6 = vld [vmem:[%s5761_s0 + $0x10] sm:$0xff]  ;;  %v4422_v14 = vld [vmem:[%s5760_s1 + $0x200] sm:$0xff]  }
  0x18   :  { %3919 = vmatpush3.bf16.msra.mxu0 %v4370_v22  ;;  %v4415_v5 = vld [vmem:[%s5760_s1 + $0x1b8] sm:$0xff]   ;;  %v3552_v7 = vcombine.low %v17_v6, %v17_v6  ;;  %v3553_v8 = vcombine.high %v17_v6, %v17_v6  ;;  %v4423_v15 = vld [vmem:[%s5760_s1 + $0x280] sm:$0xff]   ;;  %v4424_v16 = vld [vmem:[%s5760_s1 + $0x248] sm:$0xff]  }
  0x19   :  { %3941 = vmatpush3.bf16.msra.mxu1 %v4371_v23  ;;  %3920 = vmatprep.subr.bf16.mxu0 %v4372_v24  ;;  %v18_v9 = vld [vmem:[%s5761_s0 + $0x18] sm:$0xff]  ;;  %v4425_v17 = vld [vmem:[%s5760_s1 + $0x2c8] sm:$0xff]   ;;  %v4428_v20 = vld [vmem:[%s5760_s1 + $0x250] sm:$0xff]  }
  0x1a   :  { %3942 = vmatprep.subr.bf16.mxu1 %v4373_v25  ;;  %v3554_v10 = vcombine.low %v18_v9, %v18_v9  ;;  %v3555_v11 = vcombine.high %v18_v9, %v18_v9  ;;  %v4426_v18 = vld [vmem:[%s5760_s1 + $0x208] sm:$0xff]   ;;  %v4429_v21 = vld [vmem:[%s5760_s1 + $0x2d0] sm:$0xff]   ;;  %v4432_v24 = vld [vmem:[%s5760_s1 + $0x258] sm:$0xff]  }
  0x1b   :  { %v4427_v19 = vld [vmem:[%s5760_s1 + $0x288] sm:$0xff]   ;;  %v4430_v22 = vld [vmem:[%s5760_s1 + $0x210] sm:$0xff]   ;;  %v4433_v25 = vld [vmem:[%s5760_s1 + $0x2d8] sm:$0xff]  }
  0x1c   :  { %3921 = vmatpush3.bf16.msra.mxu0 %v4374_v26  ;;  %v4431_v23 = vld [vmem:[%s5760_s1 + $0x290] sm:$0xff]   ;;  %v4434_v26 = vld [vmem:[%s5760_s1 + $0x218] sm:$0xff]   ;;  %v4440_v32 = vld [vmem:[%s5760_s1 + $0x268] sm:$0xff]  }
  0x1d   :  { %3943 = vmatpush3.bf16.msra.mxu1 %v4375_v27  ;;  %3922 = vmatprep.subr.bf16.mxu0 %v4376_v28  ;;  %v4435_v27 = vld [vmem:[%s5760_s1 + $0x298] sm:$0xff]   ;;  %v4436_v28 = vld [vmem:[%s5760_s1 + $0x260] sm:$0xff]   ;;  %v4441_v33 = vld [vmem:[%s5760_s1 + $0x2e8] sm:$0xff]  }
  0x1e   :  { %3944 = vmatprep.subr.bf16.mxu1 %v4377_v29  ;;  %v4437_v29 = vld [vmem:[%s5760_s1 + $0x2e0] sm:$0xff]   ;;  %v4443_v35 = vld [vmem:[%s5760_s1 + $0x2a8] sm:$0xff]   ;;  %v4445_v37 = vld [vmem:[%s5760_s1 + $0x2f0] sm:$0xff]  }
  0x1f   :  { %v4476_v6 = vld [vmem:[%s5760_s1 + $0x368] sm:$0xff]  }
  0x20   :  { %3923 = vmatpush3.bf16.msra.mxu0 %v4378_v30  ;;  %v4438_v30 = vld [vmem:[%s5760_s1 + $0x220] sm:$0xff]   ;;  %v4479_v9 = vld [vmem:[%s5760_s1 + $0x3a8] sm:$0xff]  }
  0x21   :  { %3945 = vmatpush3.bf16.msra.mxu1 %v4379_v31  ;;  %3952 = vmatprep.subr.bf16.mxu0 %v4384_v38  ;;  %v4439_v31 = vld [vmem:[%s5760_s1 + $0x2a0] sm:$0xff]   ;;  %v4446_v38 = vld [vmem:[%s5760_s1 + $0x230] sm:$0xff]  }
  0x22   :  { %3974 = vmatprep.subr.bf16.mxu1 %v4385_v39  ;;  %v4447_v39 = vld [vmem:[%s5760_s1 + $0x2b0] sm:$0xff]  }
  0x23   :  { %2775 = vmatmul.mubr.bf16.vlgmr.msra.gmra.mrb[0].mxu0 %v3548_v34  ;;  %v4442_v34 = vld [vmem:[%s5760_s1 + $0x228] sm:$0xff]  }
  0x24   :  { %2815 = vmatmul.mubr.bf16.vlgmr.msra.gmra.mrb[0].mxu1 %v3550_v36  ;;  %3953 = vmatpush3.bf16.msra.mxu0 %v4386_v40  ;;  %v4444_v36 = vld [vmem:[%s5760_s1 + $0x270] sm:$0xff]   ;;  %v4448_v40 = vld [vmem:[%s5760_s1 + $0x278] sm:$0xff]  }
  0x25   :  { %3975 = vmatpush3.bf16.msra.mxu1 %v4387_v41  ;;  %3954 = vmatprep.subr.bf16.mxu0 %v4388_v42  ;;  %v4449_v41 = vld [vmem:[%s5760_s1 + $0x2f8] sm:$0xff]  }
  0x26   :  { %3976 = vmatprep.subr.bf16.mxu1 %v4389_v43  ;;  %2854 = vmatprep.mubr.bf16.mxu0 %v3553_v8  ;;  %v4450_v42 = vld [vmem:[%s5760_s1 + $0x238] sm:$0xff]   ;;  %v4478_v8 = vld [vmem:[%s5760_s1 + $0x328] sm:$0xff]  }
  0x27   :  { %2894 = vmatprep.mubr.bf16.mxu1 %v3555_v11  ;;  %v4451_v43 = vld [vmem:[%s5760_s1 + $0x2b8] sm:$0xff]   ;;  %v4481_v11 = vld [vmem:[%s5760_s1 + $0x3f0] sm:$0xff]  }
  0x28   :  { %3955 = vmatpush3.bf16.msra.mxu0 %v4390_v44  ;;  %v19_v44 = vld [vmem:[%s5761_s0 + $0x20] sm:$0xff] }
  0x29   :  { %3977 = vmatpush3.bf16.msra.mxu1 %v4391_v45  ;;  %3956 = vmatprep.subr.bf16.mxu0 %v4392_v46  ;;  %v20_v45 = vld [vmem:[%s5761_s0 + $0x28] sm:$0xff]  ;;  %v3556_v46 = vcombine.low %v19_v44, %v19_v44 }
  0x2a   :  { %3978 = vmatprep.subr.bf16.mxu1 %v4393_v47  ;;  %v3557_v47 = vcombine.high %v19_v44, %v19_v44  ;;  %v4512_v44 = vld [vmem:[%s5760_s1 + $0x468] sm:$0xff]  }
  0x2c   :  { %3957 = vmatpush3.bf16.msra.mxu0 %v4394_v48  ;;  %v3558_v48 = vcombine.low %v20_v45, %v20_v45 }
  0x2d   :  { %3979 = vmatpush3.bf16.msra.mxu1 %v4395_v49  ;;  %3958 = vmatprep.subr.bf16.mxu0 %v4396_v50  ;;  %v3559_v49 = vcombine.high %v20_v45, %v20_v45  ;;  %v4456_v50 = vld [vmem:[%s5760_s1 + $0x340] sm:$0xff]   ;;  %v4513_v45 = vld [vmem:[%s5760_s1 + $0x4e8] sm:$0xff]  }
  0x2e   :  { %3980 = vmatprep.subr.bf16.mxu1 %v4397_v51  ;;  %v4457_v51 = vld [vmem:[%s5760_s1 + $0x3c0] sm:$0xff]  }
  0x30   :  { %3959 = vmatpush3.bf16.msra.mxu0 %v4398_v52  ;;  %v4458_v52 = vld [vmem:[%s5760_s1 + $0x300] sm:$0xff]  }
  0x31   :  { %3981 = vmatpush3.bf16.msra.mxu1 %v4399_v53  ;;  %3960 = vmatprep.subr.bf16.mxu0 %v4400_v54  ;;  %v4459_v53 = vld [vmem:[%s5760_s1 + $0x380] sm:$0xff]   ;;  %v4460_v54 = vld [vmem:[%s5760_s1 + $0x348] sm:$0xff]  }
  0x32   :  { %3982 = vmatprep.subr.bf16.mxu1 %v4401_v55  ;;  %v4461_v55 = vld [vmem:[%s5760_s1 + $0x3c8] sm:$0xff]  }
  0x34   :  { %3961 = vmatpush3.bf16.msra.mxu0 %v4402_v56  ;;  %v4462_v56 = vld [vmem:[%s5760_s1 + $0x308] sm:$0xff]  }
  0x35   :  { %3983 = vmatpush3.bf16.msra.mxu1 %v4403_v57  ;;  %3962 = vmatprep.subr.bf16.mxu0 %v4404_v58  ;;  %v4463_v57 = vld [vmem:[%s5760_s1 + $0x388] sm:$0xff]   ;;  %v4464_v58 = vld [vmem:[%s5760_s1 + $0x350] sm:$0xff]  }
  0x36   :  { %3984 = vmatprep.subr.bf16.mxu1 %v4405_v59  ;;  %v4465_v59 = vld [vmem:[%s5760_s1 + $0x3d0] sm:$0xff]  }
  0x38   :  { %3963 = vmatpush3.bf16.msra.mxu0 %v4406_v60  ;;  %v4466_v60 = vld [vmem:[%s5760_s1 + $0x310] sm:$0xff]  }
  0x39   :  { %3985 = vmatpush3.bf16.msra.mxu1 %v4407_v61  ;;  %3964 = vmatprep.subr.bf16.mxu0 %v4408_v62  ;;  %v4467_v61 = vld [vmem:[%s5760_s1 + $0x390] sm:$0xff]   ;;  %v4468_v62 = vld [vmem:[%s5760_s1 + $0x358] sm:$0xff]  }
  0x3a   :  { %3986 = vmatprep.subr.bf16.mxu1 %v4409_v63  ;;  %v4469_v63 = vld [vmem:[%s5760_s1 + $0x3d8] sm:$0xff]  }
  0x3c   :  { %3965 = vmatpush3.bf16.msra.mxu0 %v4410_v0  ;;  %v4470_v0 = vld [vmem:[%s5760_s1 + $0x318] sm:$0xff]  }
  0x3d   :  { %3987 = vmatpush3.bf16.msra.mxu1 %v4411_v1  ;;  %3966 = vmatprep.subr.bf16.mxu0 %v4412_v2  ;;  %v4471_v1 = vld [vmem:[%s5760_s1 + $0x398] sm:$0xff]   ;;  %v4472_v2 = vld [vmem:[%s5760_s1 + $0x360] sm:$0xff]  }
  0x3e   :  { %3988 = vmatprep.subr.bf16.mxu1 %v4413_v3  ;;  %v4473_v3 = vld [vmem:[%s5760_s1 + $0x3e0] sm:$0xff]  }
  0x40   :  { %3967 = vmatpush3.bf16.msra.mxu0 %v4414_v4  ;;  %v4474_v4 = vld [vmem:[%s5760_s1 + $0x320] sm:$0xff]  }
  0x41   :  { %3989 = vmatpush3.bf16.msra.mxu1 %v4415_v5  ;;  %3996 = vmatprep.subr.bf16.mxu0 %v4420_v12  ;;  %v4475_v5 = vld [vmem:[%s5760_s1 + $0x3a0] sm:$0xff]   ;;  %v4482_v12 = vld [vmem:[%s5760_s1 + $0x330] sm:$0xff]  }
  0x42   :  { %4018 = vmatprep.subr.bf16.mxu1 %v4421_v13  ;;  %v4483_v13 = vld [vmem:[%s5760_s1 + $0x3b0] sm:$0xff]  }
  0x43   :  { %2855 = vmatmul.mubr.bf16.vlgmr.msra.gmra.mrb[4].mxu0 %v3552_v7  ;;  %v4477_v7 = vld [vmem:[%s5760_s1 + $0x3e8] sm:$0xff]  }
  0x44   :  { %2895 = vmatmul.mubr.bf16.vlgmr.msra.gmra.mrb[4].mxu1 %v3554_v10  ;;  %3997 = vmatpush3.bf16.msra.mxu0 %v4422_v14  ;;  %v4480_v10 = vld [vmem:[%s5760_s1 + $0x370] sm:$0xff]   ;;  %v4484_v14 = vld [vmem:[%s5760_s1 + $0x378] sm:$0xff]  }
  0x45   :  { %4019 = vmatpush3.bf16.msra.mxu1 %v4423_v15  ;;  %3998 = vmatprep.subr.bf16.mxu0 %v4424_v16  ;;  %v4485_v15 = vld [vmem:[%s5760_s1 + $0x3f8] sm:$0xff]  }
  0x46   :  { %4020 = vmatprep.subr.bf16.mxu1 %v4425_v17  ;;  %2934 = vmatprep.mubr.bf16.mxu0 %v3557_v47  ;;  %v4486_v16 = vld [vmem:[%s5760_s1 + $0x338] sm:$0xff]   ;;  %v4515_v47 = vld [vmem:[%s5760_s1 + $0x4a8] sm:$0xff]  }
  0x47   :  { %2974 = vmatprep.mubr.bf16.mxu1 %v3559_v49  ;;  %v4487_v17 = vld [vmem:[%s5760_s1 + $0x3b8] sm:$0xff]   ;;  %v4517_v49 = vld [vmem:[%s5760_s1 + $0x4f0] sm:$0xff]  }
  0x48   :  { %3999 = vmatpush3.bf16.msra.mxu0 %v4426_v18  ;;  %v21_v18 = vld [vmem:[%s5761_s0 + $0x30] sm:$0xff] }
  0x49   :  { %4021 = vmatpush3.bf16.msra.mxu1 %v4427_v19  ;;  %4000 = vmatprep.subr.bf16.mxu0 %v4428_v20  ;;  %v22_v19 = vld [vmem:[%s5761_s0 + $0x38] sm:$0xff]  ;;  %v3560_v20 = vcombine.low %v21_v18, %v21_v18 }
  0x4a   :  { %4022 = vmatprep.subr.bf16.mxu1 %v4429_v21  ;;  %v3561_v21 = vcombine.high %v21_v18, %v21_v18  ;;  %v4548_v18 = vld [vmem:[%s5760_s1 + $0x568] sm:$0xff]  }
  0x4c   :  { %4001 = vmatpush3.bf16.msra.mxu0 %v4430_v22  ;;  %v3562_v22 = vcombine.low %v22_v19, %v22_v19 }
  0x4d   :  { %4023 = vmatpush3.bf16.msra.mxu1 %v4431_v23  ;;  %4002 = vmatprep.subr.bf16.mxu0 %v4432_v24  ;;  %v4492_v23 = vld [vmem:[%s5760_s1 + $0x440] sm:$0xff]   ;;  %v3563_v24 = vcombine.high %v22_v19, %v22_v19  ;;  %v4549_v19 = vld [vmem:[%s5760_s1 + $0x5e8] sm:$0xff]  }
  0x4e   :  { %4024 = vmatprep.subr.bf16.mxu1 %v4433_v25  ;;  %v4493_v25 = vld [vmem:[%s5760_s1 + $0x4c0] sm:$0xff]  }
  0x50   :  { %4003 = vmatpush3.bf16.msra.mxu0 %v4434_v26  ;;  %v4494_v26 = vld [vmem:[%s5760_s1 + $0x400] sm:$0xff]  }
  0x51   :  { %4025 = vmatpush3.bf16.msra.mxu1 %v4435_v27  ;;  %4004 = vmatprep.subr.bf16.mxu0 %v4436_v28  ;;  %v4495_v27 = vld [vmem:[%s5760_s1 + $0x480] sm:$0xff]   ;;  %v4496_v28 = vld [vmem:[%s5760_s1 + $0x448] sm:$0xff]  }
  0x52   :  { %4026 = vmatprep.subr.bf16.mxu1 %v4437_v29  ;;  %v4497_v29 = vld [vmem:[%s5760_s1 + $0x4c8] sm:$0xff]  }
  0x54   :  { %4005 = vmatpush3.bf16.msra.mxu0 %v4438_v30  ;;  %v4498_v30 = vld [vmem:[%s5760_s1 + $0x408] sm:$0xff]  }
  0x55   :  { %4027 = vmatpush3.bf16.msra.mxu1 %v4439_v31  ;;  %4006 = vmatprep.subr.bf16.mxu0 %v4440_v32  ;;  %v4499_v31 = vld [vmem:[%s5760_s1 + $0x488] sm:$0xff]   ;;  %v4500_v32 = vld [vmem:[%s5760_s1 + $0x450] sm:$0xff]  }
  0x56   :  { %4028 = vmatprep.subr.bf16.mxu1 %v4441_v33  ;;  %v4501_v33 = vld [vmem:[%s5760_s1 + $0x4d0] sm:$0xff]  }
  0x58   :  { %4007 = vmatpush3.bf16.msra.mxu0 %v4442_v34  ;;  %v4502_v34 = vld [vmem:[%s5760_s1 + $0x410] sm:$0xff]  }
  0x59   :  { %4029 = vmatpush3.bf16.msra.mxu1 %v4443_v35  ;;  %4008 = vmatprep.subr.bf16.mxu0 %v4444_v36  ;;  %v4503_v35 = vld [vmem:[%s5760_s1 + $0x490] sm:$0xff]   ;;  %v4504_v36 = vld [vmem:[%s5760_s1 + $0x458] sm:$0xff]  }
  0x5a   :  { %4030 = vmatprep.subr.bf16.mxu1 %v4445_v37  ;;  %v4505_v37 = vld [vmem:[%s5760_s1 + $0x4d8] sm:$0xff]  }
  0x5c   :  { %4009 = vmatpush3.bf16.msra.mxu0 %v4446_v38  ;;  %v4506_v38 = vld [vmem:[%s5760_s1 + $0x418] sm:$0xff]  }
  0x5d   :  { %4031 = vmatpush3.bf16.msra.mxu1 %v4447_v39  ;;  %4010 = vmatprep.subr.bf16.mxu0 %v4448_v40  ;;  %v4507_v39 = vld [vmem:[%s5760_s1 + $0x498] sm:$0xff]   ;;  %v4508_v40 = vld [vmem:[%s5760_s1 + $0x460] sm:$0xff]  }
  0x5e   :  { %4032 = vmatprep.subr.bf16.mxu1 %v4449_v41  ;;  %v4509_v41 = vld [vmem:[%s5760_s1 + $0x4e0] sm:$0xff]  }
  0x60   :  { %4011 = vmatpush3.bf16.msra.mxu0 %v4450_v42  ;;  %v4510_v42 = vld [vmem:[%s5760_s1 + $0x420] sm:$0xff]  }
  0x61   :  { %4033 = vmatpush3.bf16.msra.mxu1 %v4451_v43  ;;  %4040 = vmatprep.subr.bf16.mxu0 %v4456_v50  ;;  %v4511_v43 = vld [vmem:[%s5760_s1 + $0x4a0] sm:$0xff]   ;;  %v4518_v50 = vld [vmem:[%s5760_s1 + $0x430] sm:$0xff]  }
  0x62   :  { %4062 = vmatprep.subr.bf16.mxu1 %v4457_v51  ;;  %v4519_v51 = vld [vmem:[%s5760_s1 + $0x4b0] sm:$0xff]  }
  0x63   :  { %2935 = vmatmul.mubr.bf16.vlgmr.msra.gmra.mrb[8].mxu0 %v3556_v46  ;;  %v4514_v46 = vld [vmem:[%s5760_s1 + $0x428] sm:$0xff]  }
  0x64   :  { %2975 = vmatmul.mubr.bf16.vlgmr.msra.gmra.mrb[8].mxu1 %v3558_v48  ;;  %4041 = vmatpush3.bf16.msra.mxu0 %v4458_v52  ;;  %v4516_v48 = vld [vmem:[%s5760_s1 + $0x470] sm:$0xff]   ;;  %v4520_v52 = vld [vmem:[%s5760_s1 + $0x478] sm:$0xff]  }
  0x65   :  { %4063 = vmatpush3.bf16.msra.mxu1 %v4459_v53  ;;  %4042 = vmatprep.subr.bf16.mxu0 %v4460_v54  ;;  %v4521_v53 = vld [vmem:[%s5760_s1 + $0x4f8] sm:$0xff]  }
  0x66   :  { %4064 = vmatprep.subr.bf16.mxu1 %v4461_v55  ;;  %3014 = vmatprep.mubr.bf16.mxu0 %v3561_v21  ;;  %v4522_v54 = vld [vmem:[%s5760_s1 + $0x438] sm:$0xff]   ;;  %v4551_v21 = vld [vmem:[%s5760_s1 + $0x5a8] sm:$0xff]  }
  0x67   :  { %3054 = vmatprep.mubr.bf16.mxu1 %v3563_v24  ;;  %v4523_v55 = vld [vmem:[%s5760_s1 + $0x4b8] sm:$0xff]   ;;  %v4554_v24 = vld [vmem:[%s5760_s1 + $0x530] sm:$0xff]  }
  0x68   :  { %4043 = vmatpush3.bf16.msra.mxu0 %v4462_v56  ;;  %v23_v56 = vld [vmem:[%s5761_s0 + $0x40] sm:$0xff] }
  0x69   :  { %4065 = vmatpush3.bf16.msra.mxu1 %v4463_v57  ;;  %4044 = vmatprep.subr.bf16.mxu0 %v4464_v58  ;;  %v3564_v57 = vcombine.low %v23_v56, %v23_v56  ;;  %v3565_v58 = vcombine.high %v23_v56, %v23_v56  ;;  %v4584_v56 = vld [vmem:[%s5760_s1 + $0x668] sm:$0xff]  }
  0x6a   :  { %4066 = vmatprep.subr.bf16.mxu1 %v4465_v59  ;;  %v24_v59 = vld [vmem:[%s5761_s0 + $0x48] sm:$0xff] }
  0x6c   :  { %4045 = vmatpush3.bf16.msra.mxu0 %v4466_v60  ;;  %v3566_v60 = vcombine.low %v24_v59, %v24_v59 }
  0x6d   :  { %4067 = vmatpush3.bf16.msra.mxu1 %v4467_v61  ;;  %4046 = vmatprep.subr.bf16.mxu0 %v4468_v62  ;;  %v3567_v61 = vcombine.high %v24_v59, %v24_v59  ;;  %v4528_v62 = vld [vmem:[%s5760_s1 + $0x540] sm:$0xff]   ;;  %v4587_v59 = vld [vmem:[%s5760_s1 + $0x6a8] sm:$0xff]  }
  0x6e   :  { %4068 = vmatprep.subr.bf16.mxu1 %v4469_v63  ;;  %v4529_v63 = vld [vmem:[%s5760_s1 + $0x5c0] sm:$0xff]  }
  0x70   :  { %4047 = vmatpush3.bf16.msra.mxu0 %v4470_v0  ;;  %v4530_v0 = vld [vmem:[%s5760_s1 + $0x500] sm:$0xff]  }
  0x71   :  { %4069 = vmatpush3.bf16.msra.mxu1 %v4471_v1  ;;  %4048 = vmatprep.subr.bf16.mxu0 %v4472_v2  ;;  %v4531_v1 = vld [vmem:[%s5760_s1 + $0x580] sm:$0xff]   ;;  %v4532_v2 = vld [vmem:[%s5760_s1 + $0x548] sm:$0xff]  }
  0x72   :  { %4070 = vmatprep.subr.bf16.mxu1 %v4473_v3  ;;  %v4533_v3 = vld [vmem:[%s5760_s1 + $0x5c8] sm:$0xff]  }
  0x74   :  { %4049 = vmatpush3.bf16.msra.mxu0 %v4474_v4  ;;  %v4534_v4 = vld [vmem:[%s5760_s1 + $0x508] sm:$0xff]  }
  0x75   :  { %4071 = vmatpush3.bf16.msra.mxu1 %v4475_v5  ;;  %4050 = vmatprep.subr.bf16.mxu0 %v4476_v6  ;;  %v4535_v5 = vld [vmem:[%s5760_s1 + $0x588] sm:$0xff]   ;;  %v4536_v6 = vld [vmem:[%s5760_s1 + $0x550] sm:$0xff]  }
  0x76   :  { %4072 = vmatprep.subr.bf16.mxu1 %v4477_v7  ;;  %v4537_v7 = vld [vmem:[%s5760_s1 + $0x5d0] sm:$0xff]  }
  0x78   :  { %4051 = vmatpush3.bf16.msra.mxu0 %v4478_v8  ;;  %v4538_v8 = vld [vmem:[%s5760_s1 + $0x510] sm:$0xff]  }
  0x79   :  { %4073 = vmatpush3.bf16.msra.mxu1 %v4479_v9  ;;  %4052 = vmatprep.subr.bf16.mxu0 %v4480_v10  ;;  %v4539_v9 = vld [vmem:[%s5760_s1 + $0x590] sm:$0xff]   ;;  %v4540_v10 = vld [vmem:[%s5760_s1 + $0x558] sm:$0xff]  }
  0x7a   :  { %4074 = vmatprep.subr.bf16.mxu1 %v4481_v11  ;;  %v4541_v11 = vld [vmem:[%s5760_s1 + $0x5d8] sm:$0xff]  }
  0x7c   :  { %4053 = vmatpush3.bf16.msra.mxu0 %v4482_v12  ;;  %v4542_v12 = vld [vmem:[%s5760_s1 + $0x518] sm:$0xff]  }
  0x7d   :  { %4075 = vmatpush3.bf16.msra.mxu1 %v4483_v13  ;;  %4054 = vmatprep.subr.bf16.mxu0 %v4484_v14  ;;  %v4543_v13 = vld [vmem:[%s5760_s1 + $0x598] sm:$0xff]   ;;  %v4544_v14 = vld [vmem:[%s5760_s1 + $0x560] sm:$0xff]  }
  0x7e   :  { %4076 = vmatprep.subr.bf16.mxu1 %v4485_v15  ;;  %v4545_v15 = vld [vmem:[%s5760_s1 + $0x5e0] sm:$0xff]  }
  0x80   :  { %4055 = vmatpush3.bf16.msra.mxu0 %v4486_v16  ;;  %v4546_v16 = vld [vmem:[%s5760_s1 + $0x520] sm:$0xff]  }
  0x81   :  { %4077 = vmatpush3.bf16.msra.mxu1 %v4487_v17  ;;  %4084 = vmatprep.subr.bf16.mxu0 %v4492_v23  ;;  %v4547_v17 = vld [vmem:[%s5760_s1 + $0x5a0] sm:$0xff]   ;;  %v4553_v23 = vld [vmem:[%s5760_s1 + $0x5f0] sm:$0xff]  }
  0x82   :  { %4106 = vmatprep.subr.bf16.mxu1 %v4493_v25  ;;  %v4555_v25 = vld [vmem:[%s5760_s1 + $0x5b0] sm:$0xff]  }
  0x83   :  { %3015 = vmatmul.mubr.bf16.vlgmr.msra.gmra.mrb[12].mxu0 %v3560_v20  ;;  %v4550_v20 = vld [vmem:[%s5760_s1 + $0x528] sm:$0xff]  }
  0x84   :  { %3055 = vmatmul.mubr.bf16.vlgmr.msra.gmra.mrb[12].mxu1 %v3562_v22  ;;  %4085 = vmatpush3.bf16.msra.mxu0 %v4494_v26  ;;  %v4552_v22 = vld [vmem:[%s5760_s1 + $0x570] sm:$0xff]   ;;  %v4556_v26 = vld [vmem:[%s5760_s1 + $0x578] sm:$0xff]  }
  0x85   :  { %4107 = vmatpush3.bf16.msra.mxu1 %v4495_v27  ;;  %4086 = vmatprep.subr.bf16.mxu0 %v4496_v28  ;;  %v4557_v27 = vld [vmem:[%s5760_s1 + $0x5f8] sm:$0xff]  }
  0x86   :  { %4108 = vmatprep.subr.bf16.mxu1 %v4497_v29  ;;  %3094 = vmatprep.mubr.bf16.mxu0 %v3565_v58  ;;  %v4558_v28 = vld [vmem:[%s5760_s1 + $0x538] sm:$0xff]   ;;  %v4586_v58 = vld [vmem:[%s5760_s1 + $0x628] sm:$0xff]  }
  0x87   :  { %3134 = vmatprep.mubr.bf16.mxu1 %v3567_v61  ;;  %v4559_v29 = vld [vmem:[%s5760_s1 + $0x5b8] sm:$0xff]   ;;  %v4589_v61 = vld [vmem:[%s5760_s1 + $0x6f0] sm:$0xff]  }
  0x88   :  { %4087 = vmatpush3.bf16.msra.mxu0 %v4498_v30  ;;  %v25_v30 = vld [vmem:[%s5761_s0 + $0x50] sm:$0xff] }
  0x89   :  { %4109 = vmatpush3.bf16.msra.mxu1 %v4499_v31  ;;  %4088 = vmatprep.subr.bf16.mxu0 %v4500_v32  ;;  %v26_v31 = vld [vmem:[%s5761_s0 + $0x58] sm:$0xff]  ;;  %v3568_v32 = vcombine.low %v25_v30, %v25_v30 }
  0x8a   :  { %4110 = vmatprep.subr.bf16.mxu1 %v4501_v33  ;;  %v3569_v33 = vcombine.high %v25_v30, %v25_v30  ;;  %v4619_v30 = vld [vmem:[%s5760_s1 + $0x7a0] sm:$0xff]  }
  0x8c   :  { %4089 = vmatpush3.bf16.msra.mxu0 %v4502_v34  ;;  %v3570_v34 = vcombine.low %v26_v31, %v26_v31 }
  0x8d   :  { %4111 = vmatpush3.bf16.msra.mxu1 %v4503_v35  ;;  %4090 = vmatprep.subr.bf16.mxu0 %v4504_v36  ;;  %v3571_v35 = vcombine.high %v26_v31, %v26_v31  ;;  %v4564_v36 = vld [vmem:[%s5760_s1 + $0x640] sm:$0xff]  }
  0x8e   :  { %4112 = vmatprep.subr.bf16.mxu1 %v4505_v37  ;;  %v4565_v37 = vld [vmem:[%s5760_s1 + $0x6c0] sm:$0xff]  }
  0x90   :  { %4091 = vmatpush3.bf16.msra.mxu0 %v4506_v38  ;;  %v4566_v38 = vld [vmem:[%s5760_s1 + $0x600] sm:$0xff]  }
  0x91   :  { %4113 = vmatpush3.bf16.msra.mxu1 %v4507_v39  ;;  %4092 = vmatprep.subr.bf16.mxu0 %v4508_v40  ;;  %v4567_v39 = vld [vmem:[%s5760_s1 + $0x680] sm:$0xff]   ;;  %v4568_v40 = vld [vmem:[%s5760_s1 + $0x648] sm:$0xff]  }
  0x92   :  { %4114 = vmatprep.subr.bf16.mxu1 %v4509_v41  ;;  %v4569_v41 = vld [vmem:[%s5760_s1 + $0x6c8] sm:$0xff]  }
  0x94   :  { %4093 = vmatpush3.bf16.msra.mxu0 %v4510_v42  ;;  %v4570_v42 = vld [vmem:[%s5760_s1 + $0x608] sm:$0xff]  }
  0x95   :  { %4115 = vmatpush3.bf16.msra.mxu1 %v4511_v43  ;;  %4094 = vmatprep.subr.bf16.mxu0 %v4512_v44  ;;  %v4571_v43 = vld [vmem:[%s5760_s1 + $0x688] sm:$0xff]   ;;  %v4572_v44 = vld [vmem:[%s5760_s1 + $0x650] sm:$0xff]  }
  0x96   :  { %4116 = vmatprep.subr.bf16.mxu1 %v4513_v45  ;;  %v4573_v45 = vld [vmem:[%s5760_s1 + $0x6d0] sm:$0xff]  }
  0x98   :  { %4095 = vmatpush3.bf16.msra.mxu0 %v4514_v46  ;;  %v4574_v46 = vld [vmem:[%s5760_s1 + $0x610] sm:$0xff]  }
  0x99   :  { %4117 = vmatpush3.bf16.msra.mxu1 %v4515_v47  ;;  %4096 = vmatprep.subr.bf16.mxu0 %v4516_v48  ;;  %v4575_v47 = vld [vmem:[%s5760_s1 + $0x690] sm:$0xff]   ;;  %v4576_v48 = vld [vmem:[%s5760_s1 + $0x658] sm:$0xff]  }
  0x9a   :  { %4118 = vmatprep.subr.bf16.mxu1 %v4517_v49  ;;  %v4577_v49 = vld [vmem:[%s5760_s1 + $0x6d8] sm:$0xff]  }
  0x9c   :  { %4097 = vmatpush3.bf16.msra.mxu0 %v4518_v50  ;;  %v4578_v50 = vld [vmem:[%s5760_s1 + $0x618] sm:$0xff]  }
  0x9d   :  { %4119 = vmatpush3.bf16.msra.mxu1 %v4519_v51  ;;  %4098 = vmatprep.subr.bf16.mxu0 %v4520_v52  ;;  %v4579_v51 = vld [vmem:[%s5760_s1 + $0x698] sm:$0xff]   ;;  %v4580_v52 = vld [vmem:[%s5760_s1 + $0x660] sm:$0xff]  }
  0x9e   :  { %4120 = vmatprep.subr.bf16.mxu1 %v4521_v53  ;;  %v4581_v53 = vld [vmem:[%s5760_s1 + $0x6e0] sm:$0xff]  }
  0xa0   :  { %4099 = vmatpush3.bf16.msra.mxu0 %v4522_v54  ;;  %v4582_v54 = vld [vmem:[%s5760_s1 + $0x620] sm:$0xff]  }
  0xa1   :  { %4121 = vmatpush3.bf16.msra.mxu1 %v4523_v55  ;;  %4128 = vmatprep.subr.bf16.mxu0 %v4528_v62  ;;  %v4583_v55 = vld [vmem:[%s5760_s1 + $0x6a0] sm:$0xff]   ;;  %v4590_v62 = vld [vmem:[%s5760_s1 + $0x630] sm:$0xff]  }
  0xa2   :  { %4150 = vmatprep.subr.bf16.mxu1 %v4529_v63  ;;  %v4591_v63 = vld [vmem:[%s5760_s1 + $0x6b0] sm:$0xff]  }
  0xa3   :  { %3095 = vmatmul.mubr.bf16.vlgmr.msra.gmra.mrb[16].mxu0 %v3564_v57  ;;  %v4585_v57 = vld [vmem:[%s5760_s1 + $0x6e8] sm:$0xff]  }
  0xa4   :  { %3135 = vmatmul.mubr.bf16.vlgmr.msra.gmra.mrb[16].mxu1 %v3566_v60  ;;  %4129 = vmatpush3.bf16.msra.mxu0 %v4530_v0  ;;  %v4588_v60 = vld [vmem:[%s5760_s1 + $0x670] sm:$0xff]   ;;  %v4592_v0 = vld [vmem:[%s5760_s1 + $0x678] sm:$0xff]  }
  0xa5   :  { %4151 = vmatpush3.bf16.msra.mxu1 %v4531_v1  ;;  %4130 = vmatprep.subr.bf16.mxu0 %v4532_v2  ;;  %v4593_v1 = vld [vmem:[%s5760_s1 + $0x6f8] sm:$0xff]  }
  0xa6   :  { %4152 = vmatprep.subr.bf16.mxu1 %v4533_v3  ;;  %3174 = vmatprep.mubr.bf16.mxu0 %v3569_v33  ;;  %v4594_v2 = vld [vmem:[%s5760_s1 + $0x638] sm:$0xff]  }
  0xa7   :  { %3214 = vmatprep.mubr.bf16.mxu1 %v3571_v35  ;;  %v4595_v3 = vld [vmem:[%s5760_s1 + $0x6b8] sm:$0xff]  }
  0xa8   :  { %4131 = vmatpush3.bf16.msra.mxu0 %v4534_v4  ;;  %v27_v4 = vld [vmem:[%s5761_s0 + $0x60] sm:$0xff] }
  0xa9   :  { %4153 = vmatpush3.bf16.msra.mxu1 %v4535_v5  ;;  %4132 = vmatprep.subr.bf16.mxu0 %v4536_v6  ;;  %v28_v5 = vld [vmem:[%s5761_s0 + $0x68] sm:$0xff]  ;;  %v3572_v6 = vcombine.low %v27_v4, %v27_v4 }
  0xaa   :  { %4154 = vmatprep.subr.bf16.mxu1 %v4537_v7  ;;  %v3573_v7 = vcombine.high %v27_v4, %v27_v4  ;;  %v4643_v4 = vld [vmem:[%s5760_s1 + $0x888] sm:$0xff]  }
  0xac   :  { %4133 = vmatpush3.bf16.msra.mxu0 %v4538_v8  ;;  %v3574_v8 = vcombine.low %v28_v5, %v28_v5 }
  0xad   :  { %4155 = vmatpush3.bf16.msra.mxu1 %v4539_v9  ;;  %4134 = vmatprep.subr.bf16.mxu0 %v4540_v10  ;;  %v4600_v9 = vld [vmem:[%s5760_s1 + $0x740] sm:$0xff]   ;;  %v3575_v10 = vcombine.high %v28_v5, %v28_v5  ;;  %v4644_v5 = vld [vmem:[%s5760_s1 + $0x850] sm:$0xff]  }
  0xae   :  { %4156 = vmatprep.subr.bf16.mxu1 %v4541_v11  ;;  %v4601_v11 = vld [vmem:[%s5760_s1 + $0x7c0] sm:$0xff]  }
  0xb0   :  { %4135 = vmatpush3.bf16.msra.mxu0 %v4542_v12  ;;  %v4602_v12 = vld [vmem:[%s5760_s1 + $0x700] sm:$0xff]  }
  0xb1   :  { %4157 = vmatpush3.bf16.msra.mxu1 %v4543_v13  ;;  %4136 = vmatprep.subr.bf16.mxu0 %v4544_v14  ;;  %v4603_v13 = vld [vmem:[%s5760_s1 + $0x780] sm:$0xff]   ;;  %v4604_v14 = vld [vmem:[%s5760_s1 + $0x748] sm:$0xff]  }
  0xb2   :  { %4158 = vmatprep.subr.bf16.mxu1 %v4545_v15  ;;  %v4605_v15 = vld [vmem:[%s5760_s1 + $0x7c8] sm:$0xff]  }
  0xb4   :  { %4137 = vmatpush3.bf16.msra.mxu0 %v4546_v16  ;;  %v4606_v16 = vld [vmem:[%s5760_s1 + $0x708] sm:$0xff]  }
  0xb5   :  { %4159 = vmatpush3.bf16.msra.mxu1 %v4547_v17  ;;  %4138 = vmatprep.subr.bf16.mxu0 %v4548_v18  ;;  %v4607_v17 = vld [vmem:[%s5760_s1 + $0x788] sm:$0xff]   ;;  %v4608_v18 = vld [vmem:[%s5760_s1 + $0x750] sm:$0xff]  }
  0xb6   :  { %4160 = vmatprep.subr.bf16.mxu1 %v4549_v19  ;;  %v4609_v19 = vld [vmem:[%s5760_s1 + $0x7d0] sm:$0xff]  }
  0xb8   :  { %4139 = vmatpush3.bf16.msra.mxu0 %v4550_v20  ;;  %v4610_v20 = vld [vmem:[%s5760_s1 + $0x710] sm:$0xff]  }
  0xb9   :  { %4161 = vmatpush3.bf16.msra.mxu1 %v4551_v21  ;;  %4140 = vmatprep.subr.bf16.mxu0 %v4552_v22  ;;  %v4611_v21 = vld [vmem:[%s5760_s1 + $0x790] sm:$0xff]   ;;  %v4612_v22 = vld [vmem:[%s5760_s1 + $0x758] sm:$0xff]  }
  0xba   :  { %4162 = vmatprep.subr.bf16.mxu1 %v4553_v23  ;;  %v4613_v23 = vld [vmem:[%s5760_s1 + $0x7d8] sm:$0xff]  }
  0xbc   :  { %4141 = vmatpush3.bf16.msra.mxu0 %v4554_v24  ;;  %v4614_v24 = vld [vmem:[%s5760_s1 + $0x718] sm:$0xff]  }
  0xbd   :  { %4163 = vmatpush3.bf16.msra.mxu1 %v4555_v25  ;;  %4142 = vmatprep.subr.bf16.mxu0 %v4556_v26  ;;  %v4615_v25 = vld [vmem:[%s5760_s1 + $0x798] sm:$0xff]   ;;  %v4616_v26 = vld [vmem:[%s5760_s1 + $0x760] sm:$0xff]  }
  0xbe   :  { %4164 = vmatprep.subr.bf16.mxu1 %v4557_v27  ;;  %v4617_v27 = vld [vmem:[%s5760_s1 + $0x7e0] sm:$0xff]  }
  0xc0   :  { %4143 = vmatpush3.bf16.msra.mxu0 %v4558_v28  ;;  %v4618_v28 = vld [vmem:[%s5760_s1 + $0x720] sm:$0xff]  }
  0xc1   :  { %4165 = vmatpush3.bf16.msra.mxu1 %v4559_v29  ;;  %4172 = vmatprep.subr.bf16.mxu0 %v4564_v36 }
  0xc2   :  { %4194 = vmatprep.subr.bf16.mxu1 %v4565_v37  ;;  %v4620_v37 = vld [vmem:[%s5760_s1 + $0x768] sm:$0xff]  }
  0xc3   :  { %3175 = vmatmul.mubr.bf16.vlgmr.msra.gmra.mrb[20].mxu0 %v3568_v32  ;;  %v3547_v32 = vld [vmem:[%s5762_s2] ss:$0 sm:$0xff] }
  0xc4   :  { %3215 = vmatmul.mubr.bf16.vlgmr.msra.gmra.mrb[20].mxu1 %v3570_v34  ;;  %4173 = vmatpush3.bf16.msra.mxu0 %v4566_v38 }
  0xc5   :  { %4195 = vmatpush3.bf16.msra.mxu1 %v4567_v39  ;;  %4174 = vmatprep.subr.bf16.mxu0 %v4568_v40  ;;  %v4621_v39 = vld [vmem:[%s5760_s1 + $0x7e8] sm:$0xff]  }
  0xc6   :  { %4196 = vmatprep.subr.bf16.mxu1 %v4569_v41  ;;  %3254 = vmatprep.mubr.bf16.mxu0 %v3573_v7  ;;  %v4646_v7 = vld [vmem:[%s5760_s1 + $0x810] sm:$0xff]  }
  0xc7   :  { %3294 = vmatprep.mubr.bf16.mxu1 %v3575_v10  ;;  %v4649_v10 = vld [vmem:[%s5760_s1 + $0x8d8] sm:$0xff]  }
  0xc8   :  { %4175 = vmatpush3.bf16.msra.mxu0 %v4570_v42  ;;  %v4622_v42 = vld [vmem:[%s5760_s1 + $0x728] sm:$0xff]  }
  0xc9   :  { %4197 = vmatpush3.bf16.msra.mxu1 %v4571_v43  ;;  %4176 = vmatprep.subr.bf16.mxu0 %v4572_v44  ;;  %v4623_v44 = vld [vmem:[%s5760_s1 + $0x7a8] sm:$0xff]  }
  0xca   :  { %4198 = vmatprep.subr.bf16.mxu1 %v4573_v45 }
  0xcc   :  { %4177 = vmatpush3.bf16.msra.mxu0 %v4574_v46 }
  0xcd   :  { %4199 = vmatpush3.bf16.msra.mxu1 %v4575_v47  ;;  %4178 = vmatprep.subr.bf16.mxu0 %v4576_v48  ;;  %v4624_v47 = vld [vmem:[%s5760_s1 + $0x770] sm:$0xff]  }
  0xce   :  { %4200 = vmatprep.subr.bf16.mxu1 %v4577_v49  ;;  %v4625_v48 = vld [vmem:[%s5760_s1 + $0x7f0] sm:$0xff]  }
  0xcf   :  { %v4626_v49 = vld [vmem:[%s5760_s1 + $0x730] sm:$0xff]  }
  0xd0   :  { %4179 = vmatpush3.bf16.msra.mxu0 %v4578_v50  ;;  %v4627_v50 = vld [vmem:[%s5760_s1 + $0x7b0] sm:$0xff]  }
  0xd1   :  { %4201 = vmatpush3.bf16.msra.mxu1 %v4579_v51  ;;  %4180 = vmatprep.subr.bf16.mxu0 %v4580_v52  ;;  %v4628_v51 = vld [vmem:[%s5760_s1 + $0x778] sm:$0xff]  }
  0xd2   :  { %4202 = vmatprep.subr.bf16.mxu1 %v4581_v53  ;;  %v4629_v52 = vld [vmem:[%s5760_s1 + $0x7f8] sm:$0xff]  }
  0xd3   :  { %v4630_v53 = vld [vmem:[%s5760_s1 + $0x738] sm:$0xff]  }
  0xd4   :  { %4181 = vmatpush3.bf16.msra.mxu0 %v4582_v54  ;;  %v4631_v54 = vld [vmem:[%s5760_s1 + $0x7b8] sm:$0xff]  }
  0xd5   :  { %4203 = vmatpush3.bf16.msra.mxu1 %v4583_v55  ;;  %4182 = vmatprep.subr.bf16.mxu0 %v4584_v56  ;;  %v29_v55 = vld [vmem:[%s5761_s0 + $0x70] sm:$0xff]  ;;  %v30_v56 = vld [vmem:[%s5761_s0 + $0x78] sm:$0xff] }
  0xd6   :  { %4204 = vmatprep.subr.bf16.mxu1 %v4585_v57  ;;  %v3576_v57 = vcombine.low %v29_v55, %v29_v55 }
  0xd8   :  { %4183 = vmatpush3.bf16.msra.mxu0 %v4586_v58  ;;  %v3577_v58 = vcombine.high %v29_v55, %v29_v55  ;;  %v4680_v55 = vld [vmem:[%s5760_s1 + $0x950] sm:$0xff]  }
  0xd9   :  { %4205 = vmatpush3.bf16.msra.mxu1 %v4587_v59  ;;  %4184 = vmatprep.subr.bf16.mxu0 %v4588_v60  ;;  %v3578_v59 = vcombine.low %v30_v56, %v30_v56  ;;  %v3579_v60 = vcombine.high %v30_v56, %v30_v56  ;;  %v4681_v56 = vld [vmem:[%s5760_s1 + $0x9d0] sm:$0xff]  }
  0xda   :  { %4206 = vmatprep.subr.bf16.mxu1 %v4589_v61  ;;  %v4636_v61 = vld [vmem:[%s5760_s1 + $0x840] sm:$0xff]  }
  0xdc   :  { %4185 = vmatpush3.bf16.msra.mxu0 %v4590_v62  ;;  %v4637_v62 = vld [vmem:[%s5760_s1 + $0x8c0] sm:$0xff]  }
  0xdd   :  { %4207 = vmatpush3.bf16.msra.mxu1 %v4591_v63  ;;  %4186 = vmatprep.subr.bf16.mxu0 %v4592_v0  ;;  %v4638_v63 = vld [vmem:[%s5760_s1 + $0x800] sm:$0xff]  }
  0xde   :  { %4208 = vmatprep.subr.bf16.mxu1 %v4593_v1  ;;  %v4639_v0 = vld [vmem:[%s5760_s1 + $0x880] sm:$0xff]   ;;  %v4640_v1 = vld [vmem:[%s5760_s1 + $0x848] sm:$0xff]  }
  0xe0   :  { %4187 = vmatpush3.bf16.msra.mxu0 %v4594_v2  ;;  %v4641_v2 = vld [vmem:[%s5760_s1 + $0x8c8] sm:$0xff]  }
  0xe1   :  { %4209 = vmatpush3.bf16.msra.mxu1 %v4595_v3  ;;  %4216 = vmatprep.subr.bf16.mxu0 %v4600_v9  ;;  %v4642_v3 = vld [vmem:[%s5760_s1 + $0x808] sm:$0xff]   ;;  %v4648_v9 = vld [vmem:[%s5760_s1 + $0x858] sm:$0xff]  }
  0xe2   :  { %4238 = vmatprep.subr.bf16.mxu1 %v4601_v11  ;;  %v4650_v11 = vld [vmem:[%s5760_s1 + $0x818] sm:$0xff]  }
  0xe3   :  { %3255 = vmatmul.mubr.bf16.vlgmr.msra.gmra.mrb[24].mxu0 %v3572_v6  ;;  %v4645_v6 = vld [vmem:[%s5760_s1 + $0x8d0] sm:$0xff]  }
  0xe4   :  { %3295 = vmatmul.mubr.bf16.vlgmr.msra.gmra.mrb[24].mxu1 %v3574_v8  ;;  %4217 = vmatpush3.bf16.msra.mxu0 %v4602_v12  ;;  %v4647_v8 = vld [vmem:[%s5760_s1 + $0x890] sm:$0xff]   ;;  %v4651_v12 = vld [vmem:[%s5760_s1 + $0x898] sm:$0xff]  }
  0xe5   :  { %4239 = vmatpush3.bf16.msra.mxu1 %v4603_v13  ;;  %4218 = vmatprep.subr.bf16.mxu0 %v4604_v14  ;;  %v4652_v13 = vld [vmem:[%s5760_s1 + $0x860] sm:$0xff]  }
  0xe6   :  { %4240 = vmatprep.subr.bf16.mxu1 %v4605_v15  ;;  %3334 = vmatprep.mubr.bf16.mxu0 %v3577_v58  ;;  %v4653_v14 = vld [vmem:[%s5760_s1 + $0x8e0] sm:$0xff]   ;;  %v4683_v58 = vld [vmem:[%s5760_s1 + $0x990] sm:$0xff]  }
  0xe7   :  { %3374 = vmatprep.mubr.bf16.mxu1 %v3579_v60  ;;  %v4654_v15 = vld [vmem:[%s5760_s1 + $0x820] sm:$0xff]   ;;  %v4685_v60 = vld [vmem:[%s5760_s1 + $0x9d8] sm:$0xff]  }
  0xe8   :  { %4219 = vmatpush3.bf16.msra.mxu0 %v4606_v16 }
  0xe9   :  { %4241 = vmatpush3.bf16.msra.mxu1 %v4607_v17  ;;  %4220 = vmatprep.subr.bf16.mxu0 %v4608_v18  ;;  %v4655_v17 = vld [vmem:[%s5760_s1 + $0x8a0] sm:$0xff]  }
  0xea   :  { %4242 = vmatprep.subr.bf16.mxu1 %v4609_v19 }
  0xec   :  { %4221 = vmatpush3.bf16.msra.mxu0 %v4610_v20 }
  0xed   :  { %4243 = vmatpush3.bf16.msra.mxu1 %v4611_v21  ;;  %4222 = vmatprep.subr.bf16.mxu0 %v4612_v22 }
  0xee   :  { %4244 = vmatprep.subr.bf16.mxu1 %v4613_v23  ;;  %v4656_v23 = vld [vmem:[%s5760_s1 + $0x868] sm:$0xff]  }
  0xf0   :  { %4223 = vmatpush3.bf16.msra.mxu0 %v4614_v24 }
  0xf1   :  { %4245 = vmatpush3.bf16.msra.mxu1 %v4615_v25  ;;  %4224 = vmatprep.subr.bf16.mxu0 %v4616_v26  ;;  %v4657_v25 = vld [vmem:[%s5760_s1 + $0x8e8] sm:$0xff]  }
  0xf2   :  { %4246 = vmatprep.subr.bf16.mxu1 %v4617_v27 }
  0xf4   :  { %4225 = vmatpush3.bf16.msra.mxu0 %v4618_v28  ;;  %v4658_v28 = vld [vmem:[%s5760_s1 + $0x828] sm:$0xff]  }
  0xf5   :  { %4247 = vmatpush3.bf16.msra.mxu1 %v4619_v30  ;;  %4226 = vmatprep.subr.bf16.mxu0 %v4620_v37  ;;  %v4659_v30 = vld [vmem:[%s5760_s1 + $0x8a8] sm:$0xff]   ;;  %v4664_v37 = vld [vmem:[%s5760_s1 + $0x878] sm:$0xff]  }
  0xf6   :  { %v3924_v29 = vpop.f32.mrb[0].mxu0  ;;  %4248 = vmatprep.subr.bf16.mxu1 %v4621_v39  ;;  %v4666_v39 = vld [vmem:[%s5760_s1 + $0x838] sm:$0xff]  }
  0xf7   :  { %v3946_v31 = vpop.f32.mrb[0].mxu1  ;;  %v3925_v33 = vpop.f32.mrb[1].mxu0 }
  0xf8   :  { %v3947_v34 = vpop.f32.mrb[1].mxu1  ;;  %v3926_v35 = vadd.f32 %v3925_v33, %v3924_v29  ;;  %v3927_v38 = vpop.f32.mrb[2].mxu0  ;;  %4227 = vmatpush3.bf16.msra.mxu0 %v4622_v42  ;;  %v4660_v33 = vld [vmem:[%s5760_s1 + $0x870] sm:$0xff]   ;;  %v32_v42 = vld [vmem:[%s5761_s0 + $0x88] sm:$0xff] }
  0xf9   :  { %v3948_v36 = vadd.f32 %v3947_v34, %v3946_v31  ;;  %v3949_v40 = vpop.f32.mrb[2].mxu1  ;;  %v3928_v43 = vpop.f32.mrb[3].mxu0  ;;  %4249 = vmatpush3.bf16.msra.mxu1 %v4623_v44  ;;  %4228 = vmatprep.subr.bf16.mxu0 %v4624_v47  ;;  %v4661_v34 = vld [vmem:[%s5760_s1 + $0x8f0] sm:$0xff]   ;;  %v4665_v38 = vld [vmem:[%s5760_s1 + $0x8f8] sm:$0xff]   ;;  %v4672_v47 = vld [vmem:[%s5760_s1 + $0x940] sm:$0xff]  }
  0xfa   :  { %v2777_v41 = vadd.f32 %v3926_v35, %v3547_v32  ;;  %v3950_v45 = vpop.f32.mrb[3].mxu1  ;;  %4250 = vmatprep.subr.bf16.mxu1 %v4625_v48  ;;  %v4662_v35 = vld [vmem:[%s5760_s1 + $0x830] sm:$0xff]   ;;  %v4667_v40 = vld [vmem:[%s5760_s1 + $0x8b8] sm:$0xff]   ;;  %v4673_v48 = vld [vmem:[%s5760_s1 + $0x9c0] sm:$0xff]  }
  0xfb   :  { %v3582_v45 = vcombine.low %v32_v42, %v32_v42 }
  0xfc   :  { %v5517_v46 = vadd.f32 %v3948_v36, %v2777_v41  ;;  %4229 = vmatpush3.bf16.msra.mxu0 %v4626_v49  ;;  %v4663_v36 = vld [vmem:[%s5760_s1 + $0x8b0] sm:$0xff]   ;;  %v31_v41 = vld [vmem:[%s5761_s0 + $0x80] sm:$0xff] }
  0xfd   :  { %4251 = vmatpush3.bf16.msra.mxu1 %v4627_v50  ;;  %4230 = vmatprep.subr.bf16.mxu0 %v4628_v51  ;;  %v3580_v43 = vcombine.low %v31_v41, %v31_v41  ;;  %v3581_v44 = vcombine.high %v31_v41, %v31_v41  ;;  %v4674_v49 = vld [vmem:[%s5760_s1 + $0x900] sm:$0xff]   ;;  %v4676_v51 = vld [vmem:[%s5760_s1 + $0x948] sm:$0xff]  }
  0xfe   :  { %4252 = vmatprep.subr.bf16.mxu1 %v4629_v52  ;;  %v4675_v50 = vld [vmem:[%s5760_s1 + $0x980] sm:$0xff]   ;;  %v4677_v52 = vld [vmem:[%s5760_s1 + $0x9c8] sm:$0xff]  }
 0x100   :  { %4231 = vmatpush3.bf16.msra.mxu0 %v4630_v53  ;;  %v4678_v53 = vld [vmem:[%s5760_s1 + $0x908] sm:$0xff]  }
 0x101   :  { %4253 = vmatpush3.bf16.msra.mxu1 %v4631_v54  ;;  %4260 = vmatprep.subr.bf16.mxu0 %v4636_v61  ;;  %v4679_v54 = vld [vmem:[%s5760_s1 + $0x988] sm:$0xff]   ;;  %v4686_v61 = vld [vmem:[%s5760_s1 + $0x918] sm:$0xff]  }
 0x102   :  { %4282 = vmatprep.subr.bf16.mxu1 %v4637_v62  ;;  %v4687_v62 = vld [vmem:[%s5760_s1 + $0x998] sm:$0xff]  }
 0x103   :  { %3335 = vmatmul.mubr.bf16.vlgmr.msra.gmra.mrb[28].mxu0 %v3576_v57  ;;  %v4682_v57 = vld [vmem:[%s5760_s1 + $0x910] sm:$0xff]  }
 0x104   :  { %3375 = vmatmul.mubr.bf16.vlgmr.msra.gmra.mrb[28].mxu1 %v3578_v59  ;;  %4261 = vmatpush3.bf16.msra.mxu0 %v4638_v63  ;;  %v4684_v59 = vld [vmem:[%s5760_s1 + $0x958] sm:$0xff]   ;;  %v4688_v63 = vld [vmem:[%s5760_s1 + $0x960] sm:$0xff]  }
 0x105   :  { %4283 = vmatpush3.bf16.msra.mxu1 %v4639_v0  ;;  %4262 = vmatprep.subr.bf16.mxu0 %v4640_v1  ;;  %v4689_v0 = vld [vmem:[%s5760_s1 + $0x9e0] sm:$0xff]  }
 0x106   :  { %4284 = vmatprep.subr.bf16.mxu1 %v4641_v2  ;;  %3414 = vmatprep.mubr.bf16.mxu0 %v3581_v44  ;;  %v4690_v2 = vld [vmem:[%s5760_s1 + $0x920] sm:$0xff]  }
 0x108   :  { %4263 = vmatpush3.bf16.msra.mxu0 %v4642_v3 }
 0x109   :  { %4285 = vmatpush3.bf16.msra.mxu1 %v4643_v4  ;;  %4264 = vmatprep.subr.bf16.mxu0 %v4644_v5  ;;  %v4691_v4 = vld [vmem:[%s5760_s1 + $0x9a0] sm:$0xff]  }
 0x10a   :  { %4286 = vmatprep.subr.bf16.mxu1 %v4645_v6 }
 0x10c   :  { %4265 = vmatpush3.bf16.msra.mxu0 %v4646_v7 }
 0x10d   :  { %4287 = vmatpush3.bf16.msra.mxu1 %v4647_v8  ;;  %4266 = vmatprep.subr.bf16.mxu0 %v4648_v9  ;;  %v4692_v8 = vld [vmem:[%s5760_s1 + $0x968] sm:$0xff]  }
 0x10e   :  { %4288 = vmatprep.subr.bf16.mxu1 %v4649_v10  ;;  %v4693_v10 = vld [vmem:[%s5760_s1 + $0x9e8] sm:$0xff]  }
 0x110   :  { %4267 = vmatpush3.bf16.msra.mxu0 %v4650_v11 }
 0x111   :  { %4289 = vmatpush3.bf16.msra.mxu1 %v4651_v12  ;;  %4268 = vmatprep.subr.bf16.mxu0 %v4652_v13 }
 0x112   :  { %4290 = vmatprep.subr.bf16.mxu1 %v4653_v14  ;;  %v4694_v14 = vld [vmem:[%s5760_s1 + $0x928] sm:$0xff]  }
 0x114   :  { %4269 = vmatpush3.bf16.msra.mxu0 %v4654_v15  ;;  %v4695_v15 = vld [vmem:[%s5760_s1 + $0x9a8] sm:$0xff]  }
 0x115   :  { %4291 = vmatpush3.bf16.msra.mxu1 %v4655_v17  ;;  %4270 = vmatprep.subr.bf16.mxu0 %v4656_v23  ;;  %v4700_v23 = vld [vmem:[%s5760_s1 + $0x978] sm:$0xff]  }
 0x116   :  { %v3968_v16 = vpop.f32.mrb[4].mxu0  ;;  %4292 = vmatprep.subr.bf16.mxu1 %v4657_v25  ;;  %v4702_v25 = vld [vmem:[%s5760_s1 + $0x938] sm:$0xff]  }
 0x117   :  { %v3990_v18 = vpop.f32.mrb[4].mxu1  ;;  %v3969_v19 = vpop.f32.mrb[5].mxu0 }
 0x118   :  { %v3991_v20 = vpop.f32.mrb[5].mxu1  ;;  %v3970_v21 = vadd.f32 %v3969_v19, %v3968_v16  ;;  %v3971_v24 = vpop.f32.mrb[6].mxu0  ;;  %4271 = vmatpush3.bf16.msra.mxu0 %v4658_v28  ;;  %v4696_v19 = vld [vmem:[%s5760_s1 + $0x970] sm:$0xff]   ;;  %v34_v28 = vld [vmem:[%s5761_s0 + $0x98] sm:$0xff] }
 0x119   :  { %v3992_v22 = vadd.f32 %v3991_v20, %v3990_v18  ;;  %v3993_v26 = vpop.f32.mrb[6].mxu1  ;;  %v3972_v29 = vpop.f32.mrb[7].mxu0  ;;  %4293 = vmatpush3.bf16.msra.mxu1 %v4659_v30  ;;  %4272 = vmatprep.subr.bf16.mxu0 %v4660_v33  ;;  %v4697_v20 = vld [vmem:[%s5760_s1 + $0x9f0] sm:$0xff]   ;;  %v4701_v24 = vld [vmem:[%s5760_s1 + $0x9f8] sm:$0xff]  }
 0x11a   :  { %v2857_v27 = vadd.f32 %v3970_v21, %v5517_v46  ;;  %v3994_v31 = vpop.f32.mrb[7].mxu1  ;;  %4294 = vmatprep.subr.bf16.mxu1 %v4661_v34  ;;  %v3583_v46 = vcombine.high %v32_v42, %v32_v42  ;;  %v4698_v21 = vld [vmem:[%s5760_s1 + $0x930] sm:$0xff]   ;;  %v4703_v26 = vld [vmem:[%s5760_s1 + $0x9b8] sm:$0xff]  }
 0x11b   :  { %v3586_v31 = vcombine.low %v34_v28, %v34_v28 }
 0x11c   :  { %v5622_v32 = vadd.f32 %v3992_v22, %v2857_v27  ;;  %4273 = vmatpush3.bf16.msra.mxu0 %v4662_v35  ;;  %3454 = vmatprep.mubr.bf16.mxu1 %v3583_v46  ;;  %v4699_v22 = vld [vmem:[%s5760_s1 + $0x9b0] sm:$0xff]  }
 0x11d   :  { %4295 = vmatpush3.bf16.msra.mxu1 %v4663_v36  ;;  %4274 = vmatprep.subr.bf16.mxu0 %v4664_v37  ;;  %v33_v27 = vld [vmem:[%s5761_s0 + $0x90] sm:$0xff] }
 0x11e   :  { %4296 = vmatprep.subr.bf16.mxu1 %v4665_v38  ;;  %v3584_v29 = vcombine.low %v33_v27, %v33_v27  ;;  %v3585_v30 = vcombine.high %v33_v27, %v33_v27 }
 0x120   :  { %4275 = vmatpush3.bf16.msra.mxu0 %v4666_v39 }
 0x121   :  { %4297 = vmatpush3.bf16.msra.mxu1 %v4667_v40  ;;  %4304 = vmatprep.subr.bf16.mxu0 %v4672_v47 }
 0x122   :  { %4326 = vmatprep.subr.bf16.mxu1 %v4673_v48 }
 0x123   :  { %3415 = vmatmul.mubr.bf16.vlgmr.msra.gmra.mrb[32].mxu0 %v3580_v43 }
 0x124   :  { %3455 = vmatmul.mubr.bf16.vlgmr.msra.gmra.mrb[32].mxu1 %v3582_v45  ;;  %4305 = vmatpush3.bf16.msra.mxu0 %v4674_v49 }
 0x125   :  { %4327 = vmatpush3.bf16.msra.mxu1 %v4675_v50  ;;  %4306 = vmatprep.subr.bf16.mxu0 %v4676_v51 }
 0x126   :  { %4328 = vmatprep.subr.bf16.mxu1 %v4677_v52  ;;  %3494 = vmatprep.mubr.bf16.mxu0 %v3585_v30 }
 0x128   :  { %4307 = vmatpush3.bf16.msra.mxu0 %v4678_v53 }
 0x129   :  { %4329 = vmatpush3.bf16.msra.mxu1 %v4679_v54  ;;  %4308 = vmatprep.subr.bf16.mxu0 %v4680_v55 }
 0x12a   :  { %4330 = vmatprep.subr.bf16.mxu1 %v4681_v56 }
 0x12c   :  { %4309 = vmatpush3.bf16.msra.mxu0 %v4682_v57 }
 0x12d   :  { %4331 = vmatpush3.bf16.msra.mxu1 %v4683_v58  ;;  %4310 = vmatprep.subr.bf16.mxu0 %v4684_v59 }
 0x12e   :  { %4332 = vmatprep.subr.bf16.mxu1 %v4685_v60 }
 0x130   :  { %4311 = vmatpush3.bf16.msra.mxu0 %v4686_v61 }
 0x131   :  { %4333 = vmatpush3.bf16.msra.mxu1 %v4687_v62  ;;  %4312 = vmatprep.subr.bf16.mxu0 %v4688_v63 }
 0x132   :  { %4334 = vmatprep.subr.bf16.mxu1 %v4689_v0 }
 0x134   :  { %4313 = vmatpush3.bf16.msra.mxu0 %v4690_v2 }
 0x135   :  { %4335 = vmatpush3.bf16.msra.mxu1 %v4691_v4  ;;  %4314 = vmatprep.subr.bf16.mxu0 %v4692_v8 }
 0x136   :  { %v4012_v1 = vpop.f32.mrb[8].mxu0  ;;  %4336 = vmatprep.subr.bf16.mxu1 %v4693_v10 }
 0x137   :  { %v4034_v3 = vpop.f32.mrb[8].mxu1  ;;  %v4013_v5 = vpop.f32.mrb[9].mxu0 }
 0x138   :  { %v4014_v6 = vadd.f32 %v4013_v5, %v4012_v1  ;;  %v4035_v7 = vpop.f32.mrb[9].mxu1  ;;  %v4015_v11 = vpop.f32.mrb[10].mxu0  ;;  %4315 = vmatpush3.bf16.msra.mxu0 %v4694_v14 }
 0x139   :  { %v4036_v9 = vadd.f32 %v4035_v7, %v4034_v3  ;;  %v4037_v13 = vpop.f32.mrb[10].mxu1  ;;  %v4016_v16 = vpop.f32.mrb[11].mxu0  ;;  %4337 = vmatpush3.bf16.msra.mxu1 %v4695_v15  ;;  %4316 = vmatprep.subr.bf16.mxu0 %v4696_v19 }
 0x13a   :  { %v2937_v12 = vadd.f32 %v4014_v6, %v5622_v32  ;;  %v4038_v18 = vpop.f32.mrb[11].mxu1  ;;  %4338 = vmatprep.subr.bf16.mxu1 %v4697_v20  ;;  %v3587_v32 = vcombine.high %v34_v28, %v34_v28 }
 0x13c   :  { %v2977_v17 = vadd.f32 %v4036_v9, %v2937_v12  ;;  %4317 = vmatpush3.bf16.msra.mxu0 %v4698_v21  ;;  %3534 = vmatprep.mubr.bf16.mxu1 %v3587_v32 }
 0x13d   :  { %4339 = vmatpush3.bf16.msra.mxu1 %v4699_v22  ;;  %4318 = vmatprep.subr.bf16.mxu0 %v4700_v23 }
 0x13e   :  { %4340 = vmatprep.subr.bf16.mxu1 %v4701_v24 }
 0x140   :  { %4319 = vmatpush3.bf16.msra.mxu0 %v4702_v25 }
 0x141   :  { %4341 = vmatpush3.bf16.msra.mxu1 %v4703_v26 }
 0x143   :  { %3495 = vmatmul.mubr.bf16.vlgmr.msra.gmra.mrb[36].mxu0 %v3584_v29 }
 0x144   :  { %3535 = vmatmul.mubr.bf16.vlgmr.msra.gmra.mrb[36].mxu1 %v3586_v31 }
 0x156   :  { %v4056_v33 = vpop.f32.mrb[12].mxu0 }
 0x157   :  { %v4078_v34 = vpop.f32.mrb[12].mxu1  ;;  %v4057_v35 = vpop.f32.mrb[13].mxu0 }
 0x158   :  { %v4058_v36 = vadd.f32 %v4057_v35, %v4056_v33  ;;  %v4079_v37 = vpop.f32.mrb[13].mxu1  ;;  %v4059_v38 = vpop.f32.mrb[14].mxu0 }
 0x159   :  { %v4080_v39 = vadd.f32 %v4079_v37, %v4078_v34  ;;  %v4081_v40 = vpop.f32.mrb[14].mxu1  ;;  %v4060_v41 = vpop.f32.mrb[15].mxu0 }
 0x15a   :  { %v3017_v42 = vadd.f32 %v4058_v36, %v2977_v17  ;;  %v4082_v43 = vpop.f32.mrb[15].mxu1 }
 0x15c   :  { %v3057_v44 = vadd.f32 %v4080_v39, %v3017_v42 }
 0x176   :  { %v4100_v45 = vpop.f32.mrb[16].mxu0 }
 0x177   :  { %v4122_v46 = vpop.f32.mrb[16].mxu1  ;;  %v4101_v47 = vpop.f32.mrb[17].mxu0 }
 0x178   :  { %v4123_v48 = vpop.f32.mrb[17].mxu1  ;;  %v4102_v49 = vadd.f32 %v4101_v47, %v4100_v45  ;;  %v4103_v51 = vpop.f32.mrb[18].mxu0 }
 0x179   :  { %v4124_v50 = vadd.f32 %v4123_v48, %v4122_v46  ;;  %v4125_v52 = vpop.f32.mrb[18].mxu1  ;;  %v4104_v53 = vpop.f32.mrb[19].mxu0 }
 0x17a   :  { %v4126_v54 = vpop.f32.mrb[19].mxu1  ;;  %v3097_v55 = vadd.f32 %v4102_v49, %v3057_v44 }
 0x17c   :  { %v3137_v56 = vadd.f32 %v4124_v50, %v3097_v55 }
 0x196   :  { %v4144_v57 = vpop.f32.mrb[20].mxu0 }
 0x197   :  { %v4166_v58 = vpop.f32.mrb[20].mxu1  ;;  %v4145_v59 = vpop.f32.mrb[21].mxu0 }
 0x198   :  { %v4146_v60 = vadd.f32 %v4145_v59, %v4144_v57  ;;  %v4167_v61 = vpop.f32.mrb[21].mxu1  ;;  %v4147_v62 = vpop.f32.mrb[22].mxu0 }
 0x199   :  { %v4168_v63 = vadd.f32 %v4167_v61, %v4166_v58  ;;  %v4169_v0 = vpop.f32.mrb[22].mxu1  ;;  %v4148_v1 = vpop.f32.mrb[23].mxu0 }
 0x19a   :  { %v3177_v2 = vadd.f32 %v4146_v60, %v3137_v56  ;;  %v4170_v3 = vpop.f32.mrb[23].mxu1 }
 0x19c   :  { %v3217_v4 = vadd.f32 %v4168_v63, %v3177_v2 }
 0x1b6   :  { %v4188_v5 = vpop.f32.mrb[24].mxu0 }
 0x1b7   :  { %v4210_v6 = vpop.f32.mrb[24].mxu1  ;;  %v4189_v7 = vpop.f32.mrb[25].mxu0 }
 0x1b8   :  { %v4190_v8 = vadd.f32 %v4189_v7, %v4188_v5  ;;  %v4211_v9 = vpop.f32.mrb[25].mxu1  ;;  %v4191_v10 = vpop.f32.mrb[26].mxu0 }
 0x1b9   :  { %v4212_v11 = vadd.f32 %v4211_v9, %v4210_v6  ;;  %v4213_v12 = vpop.f32.mrb[26].mxu1  ;;  %v4192_v13 = vpop.f32.mrb[27].mxu0 }
 0x1ba   :  { %v3257_v14 = vadd.f32 %v4190_v8, %v3217_v4  ;;  %v4214_v15 = vpop.f32.mrb[27].mxu1 }
 0x1bc   :  { %v3297_v16 = vadd.f32 %v4212_v11, %v3257_v14 }
 0x1d6   :  { %v4232_v17 = vpop.f32.mrb[28].mxu0 }
 0x1d7   :  { %v4254_v18 = vpop.f32.mrb[28].mxu1  ;;  %v4233_v19 = vpop.f32.mrb[29].mxu0 }
 0x1d8   :  { %v4234_v20 = vadd.f32 %v4233_v19, %v4232_v17  ;;  %v4255_v21 = vpop.f32.mrb[29].mxu1  ;;  %v4235_v22 = vpop.f32.mrb[30].mxu0 }
 0x1d9   :  { %v4256_v23 = vadd.f32 %v4255_v21, %v4254_v18  ;;  %v4257_v24 = vpop.f32.mrb[30].mxu1  ;;  %v4236_v25 = vpop.f32.mrb[31].mxu0 }
 0x1da   :  { %v3337_v26 = vadd.f32 %v4234_v20, %v3297_v16  ;;  %v4258_v27 = vpop.f32.mrb[31].mxu1 }
 0x1dc   :  { %v3377_v28 = vadd.f32 %v4256_v23, %v3337_v26 }
 0x1f6   :  { %v4276_v29 = vpop.f32.mrb[32].mxu0 }
 0x1f7   :  { %v4298_v30 = vpop.f32.mrb[32].mxu1  ;;  %v4277_v31 = vpop.f32.mrb[33].mxu0 }
 0x1f8   :  { %v4278_v32 = vadd.f32 %v4277_v31, %v4276_v29  ;;  %v4299_v33 = vpop.f32.mrb[33].mxu1  ;;  %v4279_v34 = vpop.f32.mrb[34].mxu0 }
 0x1f9   :  { %v4300_v35 = vadd.f32 %v4299_v33, %v4298_v30  ;;  %v4301_v36 = vpop.f32.mrb[34].mxu1  ;;  %v4280_v37 = vpop.f32.mrb[35].mxu0 }
 0x1fa   :  { %v3417_v38 = vadd.f32 %v4278_v32, %v3377_v28  ;;  %v4302_v39 = vpop.f32.mrb[35].mxu1 }
 0x1fc   :  { %v3457_v40 = vadd.f32 %v4300_v35, %v3417_v38 }
 0x216   :  { %v4320_v41 = vpop.f32.mrb[36].mxu0 }
 0x217   :  { %v4342_v42 = vpop.f32.mrb[36].mxu1  ;;  %v4321_v43 = vpop.f32.mrb[37].mxu0 }
 0x218   :  { %v4322_v44 = vadd.f32 %v4321_v43, %v4320_v41  ;;  %v4343_v45 = vpop.f32.mrb[37].mxu1  ;;  %v4323_v46 = vpop.f32.mrb[38].mxu0 }
 0x219   :  { %v4344_v47 = vadd.f32 %v4343_v45, %v4342_v42  ;;  %v4345_v48 = vpop.f32.mrb[38].mxu1  ;;  %v4324_v49 = vpop.f32.mrb[39].mxu0 }
 0x21a   :  { %v3497_v50 = vadd.f32 %v4322_v44, %v3457_v40  ;;  %v4346_v51 = vpop.f32.mrb[39].mxu1 }
 0x21c   :  { %v3537_v52 = vadd.f32 %v4344_v47, %v3497_v50 }
 0x21e   :  { %3542 = vst [vmem:[%s5763_s3] sm:$0xff] %v3537_v52 }

</bundles_post_ra>
